<compile_context>
chip_gen: v7x
topology: tpu7x:2x2x1
jax: 0.10.0
libtpu: 0.0.40
codegen_flags: <defaults>
</compile_context>

<pallas_src>
import math

import jax
import jax.numpy as jnp
from jax import lax
from jax.experimental import pallas as pl
from jax.experimental.pallas import tpu as pltpu

# ----------------------------- configuration -------------------------------
INPUT_CHANNELS = 4     # C_in
HIDDEN_CHANNELS = 32   # H
OUTPUT_CHANNELS = 3    # O
CDEFUNC_WIDTH = 10     # hidden width inside CDEFunc (fixed to 10 in the module)
SUBSTEPS = 4           # RK4 substeps per unit-length interpolation segment
BATCH = 2
SEQ_LEN = 8            # number of knots T  (interval = [0, T-1])

STATE = CDEFUNC_WIDTH + OUTPUT_CHANNELS          # 13 carried lanes: [q | o]


# ------------------------------ Pallas kernel -------------------------------
def _ncde_kernel(s0_ref,      # (Bt, S)        initial state [q0 | o0]
                 dx_ref,      # (T-1, Bt, C)   per-segment dX, pre-scaled by dt
                 w2_ref,      # (S, C*H)       [W2.T ; 0] fused weight (128 lanes)
                 b2_ref,      # (1, C*H)
                 tmat_ref,    # (C, C*H)       constant 0/1 channel-tile matrix
                 r_ref,       # (C*H, S)       red @ [W1.T | W_ro.T] fused reducer
                 out_ref):    # (Bt, S)        final state [q_T | o_T]
    # Load the (tiny) constants once.
    w2 = w2_ref[...]
    b2 = b2_ref[...]
    tmat = tmat_ref[...]
    r = r_ref[...]

    n_seg = dx_ref.shape[0]

    def stage(s, dxt):
        # g = tanh(linear2(relu(q)))  -- o-lanes of s hit zero rows of w2.
        g = jnp.tanh(
            jnp.dot(jnp.maximum(s, 0.0), w2,
                    preferred_element_type=jnp.float32) + b2)            # (Bt, C*H)
        # k = [dq | do] * dt : single MXU reduction against the fused constant.
        return jnp.dot(g * dxt, r, preferred_element_type=jnp.float32)   # (Bt, S)

    def segment(seg, s):
        # Broadcast dx over the H groups once per segment (reused for 16 evals).
        dxt = jnp.dot(dx_ref[seg], tmat,
                      preferred_element_type=jnp.float32)                # (Bt, C*H)
        for _ in range(SUBSTEPS):          # static unroll: 4 RK4 steps
            k1 = stage(s, dxt)
            k2 = stage(s + 0.5 * k1, dxt)
            k3 = stage(s + 0.5 * k2, dxt)
            k4 = stage(s + k3, dxt)
            s = s + (1.0 / 6.0) * (k1 + 2.0 * k2 + 2.0 * k3 + k4)
        return s

    out_ref[...] = lax.fori_loop(0, n_seg, segment, s0_ref[...])


# ------------------------------ JAX wrapper ---------------------------------
def _full_spec(a):
    n = a.ndim
    return pl.BlockSpec(a.shape, lambda i, n=n: (0,) * n)


def neural_cde_forward(coeffs, params):
    """coeffs: (B, T, C_in) float32 -> (B, O) float32."""
    B, T, C = coeffs.shape
    H, O, M = HIDDEN_CHANNELS, OUTPUT_CHANNELS, CDEFUNC_WIDTH
    CH = C * H
    S = M + O

    # Pad batch to fill f32 sublanes; cap batch tile at 64 rows and guarantee
    # >= 2 grid steps once the padded batch reaches 16 rows (megacore / v7x).
    B_pad = -(-B // 8) * 8
    if B_pad > 8:
        BT = min(64, -(-(B_pad // 2) // 8) * 8)
        B_pad = -(-B_pad // BT) * BT
    else:
        BT = B_pad
    if B_pad != B:
        coeffs = jnp.concatenate(
            [coeffs, jnp.zeros((B_pad - B, T, C), coeffs.dtype)], axis=0)

    dt = 1.0 / SUBSTEPS

    # ---- glue: fold initial()/readout() affines + constants (plain JAX) ----
    x0 = coeffs[:, 0, :]                                          # (Bp, C)
    z0 = x0 @ params["W_init"].T + params["b_init"]               # (Bp, H)
    q0 = z0 @ params["W1"].T + params["b1"]                       # (Bp, M)
    o0 = z0 @ params["W_ro"].T + params["b_ro"]                   # (Bp, O)
    s0 = jnp.concatenate([q0, o0], axis=1)                        # (Bp, S)

    # per-segment increments, pre-scaled by the RK4 substep dt
    dx = jnp.transpose(coeffs[:, 1:, :] - coeffs[:, :-1, :],
                       (1, 0, 2)) * dt                            # (T-1, Bp, C)

    # fused CDEFunc weights (column j of W2.T corresponds to flat index h*C+c)
    w2p = jnp.concatenate(
        [params["W2"].T, jnp.zeros((O, CH), jnp.float32)], axis=0)   # (S, CH)
    b2 = params["b2"].reshape(1, CH)
    # constant 0/1 channel-tile matrix: tmat[c, h*C + c] = 1
    tmat = jnp.tile(jnp.eye(C, dtype=jnp.float32), (1, H))           # (C, CH)
    # fused reducer: red[h*C+c, h] = 1;  R = red @ [W1.T | W_ro.T]
    red = jnp.repeat(jnp.eye(H, dtype=jnp.float32), C, axis=0)       # (CH, H)
    r = jnp.concatenate([red @ params["W1"].T,
                         red @ params["W_ro"].T], axis=1)            # (CH, S)

    # ---- cost estimate: tiny shapes but a long serial stage chain ----------
    n_tiles = B_pad // BT
    n_stages = (T - 1) * SUBSTEPS * 4
    flops = n_tiles * (n_stages * (4 * BT * S * CH + 2 * BT * CH)
                       + (T - 1) * 2 * BT * C * CH)
    transcendentals = n_tiles * n_stages * BT * CH
    bytes_accessed = 4 * ((T - 1) * B_pad * C + 2 * B_pad * S
                          + S * CH + CH + C * CH + CH * S)

    out = pl.pallas_call(
        _ncde_kernel,
        out_shape=jax.ShapeDtypeStruct((B_pad, S), jnp.float32),
        grid_spec=pltpu.PrefetchScalarGridSpec(
            num_scalar_prefetch=0,
            grid=(B_pad // BT,),
            in_specs=[
                pl.BlockSpec((BT, S), lambda i: (i, 0)),             # s0
                pl.BlockSpec((T - 1, BT, C), lambda i: (0, i, 0)),   # dx
                _full_spec(w2p), _full_spec(b2),
                _full_spec(tmat), _full_spec(r),
            ],
            out_specs=pl.BlockSpec((BT, S), lambda i: (i, 0)),
        ),
        compiler_params=pltpu.CompilerParams(
            dimension_semantics=("parallel",)),
        cost_estimate=pl.CostEstimate(
            flops=int(flops),
            transcendentals=int(transcendentals),
            bytes_accessed=int(bytes_accessed)),
    )(s0, dx, w2p, b2, tmat, r)

    # final state lanes [M:] are the readout accumulated in output space
    return out[:B, M:]


# --------------------- pure-JAX reference (for checking) --------------------
def neural_cde_reference(coeffs, params):
    B, T, C = coeffs.shape
    H = HIDDEN_CHANNELS

    def f(z):
        h1 = jax.nn.relu(z @ params["W1"].T + params["b1"])
        h2 = jnp.tanh(h1 @ params["W2"].T + params["b2"])
        return h2.reshape(B, H, C)

    z = coeffs[:, 0, :] @ params["W_init"].T + params["b_init"]
    dt = 1.0 / SUBSTEPS
    for i in range(T - 1):
        dx = coeffs[:, i + 1, :] - coeffs[:, i, :]
        g = lambda zz: jnp.einsum("bhc,bc->bh", f(zz), dx)
        for _ in range(SUBSTEPS):
            k1 = g(z)
            k2 = g(z + 0.5 * dt * k1)
            k3 = g(z + 0.5 * dt * k2)
            k4 = g(z + dt * k3)
            z = z + (dt / 6.0) * (k1 + 2.0 * k2 + 2.0 * k3 + k4)
    return z @ params["W_ro"].T + params["b_ro"]


# --------------------------- deterministic init ------------------------------
def init_params(key):
    """PyTorch-style default Linear init (uniform +/- 1/sqrt(fan_in))."""
    C, H, O, M = INPUT_CHANNELS, HIDDEN_CHANNELS, OUTPUT_CHANNELS, CDEFUNC_WIDTH
    ks = jax.random.split(key, 8)

    def lin(kw, kb, out_f, in_f):
        bound = 1.0 / math.sqrt(in_f)
        W = jax.random.uniform(kw, (out_f, in_f), jnp.float32, -bound, bound)
        b = jax.random.uniform(kb, (out_f,), jnp.float32, -bound, bound)
        return W, b

    W_init, b_init = lin(ks[0], ks[1], H, C)          # initial: C -> H
    W1, b1 = lin(ks[2], ks[3], M, H)                  # linear1: H -> 10
    W2, b2 = lin(ks[4], ks[5], C * H, M)              # linear2: 10 -> C*H
    W_ro, b_ro = lin(ks[6], ks[7], O, H)              # readout: H -> O
    return dict(W_init=W_init, b_init=b_init, W1=W1, b1=b1,
                W2=W2, b2=b2, W_ro=W_ro, b_ro=b_ro)


# --------------------------------- main --------------------------------------
if __name__ == "__main__":
    key = jax.random.PRNGKey(0)
    k_params, k_data = jax.random.split(key)

    params = init_params(k_params)
    coeffs = jax.random.normal(
        k_data, (BATCH, SEQ_LEN, INPUT_CHANNELS), dtype=jnp.float32)

    pred = neural_cde_forward(coeffs, params)
    pred = jax.block_until_ready(pred)

    ref = jax.block_until_ready(neural_cde_reference(coeffs, params))
    assert pred.shape == (BATCH, OUTPUT_CHANNELS)
    assert jnp.all(jnp.isfinite(pred))
    assert jnp.allclose(pred, ref, atol=1e-4, rtol=1e-4), (pred, ref)

    print("KERNEL_OK")
</pallas_src>

<mosaic_0001>
module attributes {stable_mosaic.version = 11 : i64} {
  func.func @_ncde_kernel(%arg0: i32, %arg1: memref<8x13xf32, #tpu.memory_space<vmem>>, %arg2: memref<7x8x4xf32, #tpu.memory_space<vmem>>, %arg3: memref<13x128xf32, #tpu.memory_space<vmem>>, %arg4: memref<1x128xf32, #tpu.memory_space<vmem>>, %arg5: memref<4x128xf32, #tpu.memory_space<vmem>>, %arg6: memref<128x13xf32, #tpu.memory_space<vmem>>, %arg7: memref<8x13xf32, #tpu.memory_space<vmem>>) attributes {dimension_semantics = [#tpu.dimension_semantics<parallel>], iteration_bounds = array<i64: 1>, scalar_prefetch = 0 : i64, scratch_operands = 0 : i64, tpu.core_type = #tpu.core_type<tc>, window_params = [{transform_indices = @transform_0, window_bounds = array<i64: 8, 13>}, {transform_indices = @transform_1, window_bounds = array<i64: 7, 8, 4>}, {pipeline_mode = #tpu.pipeline_mode<synchronous>, transform_indices = @transform_2, window_bounds = array<i64: 13, 128>}, {pipeline_mode = #tpu.pipeline_mode<synchronous>, transform_indices = @transform_3, window_bounds = array<i64: 1, 128>}, {pipeline_mode = #tpu.pipeline_mode<synchronous>, transform_indices = @transform_4, window_bounds = array<i64: 4, 128>}, {pipeline_mode = #tpu.pipeline_mode<synchronous>, transform_indices = @transform_5, window_bounds = array<i64: 128, 13>}, {transform_indices = @transform_6, window_bounds = array<i64: 8, 13>}]} {
    %c0 = arith.constant 0 : index
    %c0_0 = arith.constant 0 : index
    %0 = vector.load %arg3[%c0, %c0_0] : memref<13x128xf32, #tpu.memory_space<vmem>>, vector<13x128xf32>
    %c0_1 = arith.constant 0 : index
    %c0_2 = arith.constant 0 : index
    %1 = vector.load %arg4[%c0_1, %c0_2] : memref<1x128xf32, #tpu.memory_space<vmem>>, vector<1x128xf32>
    %c0_3 = arith.constant 0 : index
    %c0_4 = arith.constant 0 : index
    %2 = vector.load %arg5[%c0_3, %c0_4] : memref<4x128xf32, #tpu.memory_space<vmem>>, vector<4x128xf32>
    %c0_5 = arith.constant 0 : index
    %c0_6 = arith.constant 0 : index
    %3 = vector.load %arg6[%c0_5, %c0_6] : memref<128x13xf32, #tpu.memory_space<vmem>>, vector<128x13xf32>
    %c0_7 = arith.constant 0 : index
    %c0_8 = arith.constant 0 : index
    %4 = vector.load %arg1[%c0_7, %c0_8] : memref<8x13xf32, #tpu.memory_space<vmem>>, vector<8x13xf32>
    %c0_i32 = arith.constant 0 : i32
    %c7_i32 = arith.constant 7 : i32
    %5 = arith.addi %c0_i32, %c7_i32 : i32
    %c1_i32 = arith.constant 1 : i32
    %6 = scf.for %arg8 = %c0_i32 to %5 step %c1_i32 iter_args(%arg9 = %4) -> (vector<8x13xf32>)  : i32 {
      %8 = arith.index_cast %arg8 : i32 to index
      %c0_12 = arith.constant 0 : index
      %c0_13 = arith.constant 0 : index
      %9 = vector.load %arg2[%8, %c0_12, %c0_13] : memref<7x8x4xf32, #tpu.memory_space<vmem>>, vector<1x8x4xf32>
      %10 = vector.shape_cast %9 : vector<1x8x4xf32> to vector<8x4xf32>
      %cst = arith.constant dense<0.000000e+00> : vector<8x128xf32>
      %11 = tpu.matmul %10, %2, %cst {dimension_numbers = #tpu.dot_dimension_numbers<[1], [0], [0], [1], [0, 0, 1, 1], [], []>} : vector<8x4xf32>, vector<4x128xf32>, vector<8x128xf32> -> vector<8x128xf32>
      %cst_14 = arith.constant 0.000000e+00 : f32
      %12 = vector.broadcast %cst_14 : f32 to vector<8x13xf32>
      %13 = arith.maximumf %arg9, %12 : vector<8x13xf32>
      %cst_15 = arith.constant dense<0.000000e+00> : vector<8x128xf32>
      %14 = tpu.matmul %13, %0, %cst_15 {dimension_numbers = #tpu.dot_dimension_numbers<[1], [0], [0], [1], [0, 0, 1, 1], [], []>} : vector<8x13xf32>, vector<13x128xf32>, vector<8x128xf32> -> vector<8x128xf32>
      %15 = vector.broadcast %1 : vector<1x128xf32> to vector<8x128xf32>
      %16 = arith.addf %14, %15 : vector<8x128xf32>
      %17 = math.tanh %16 : vector<8x128xf32>
      %18 = arith.mulf %17, %11 : vector<8x128xf32>
      %cst_16 = arith.constant dense<0.000000e+00> : vector<8x13xf32>
      %19 = tpu.matmul %18, %3, %cst_16 {dimension_numbers = #tpu.dot_dimension_numbers<[1], [0], [0], [1], [0, 0, 1, 1], [], []>} : vector<8x128xf32>, vector<128x13xf32>, vector<8x13xf32> -> vector<8x13xf32>
      %cst_17 = arith.constant 5.000000e-01 : f32
      %20 = vector.broadcast %cst_17 : f32 to vector<8x13xf32>
      %21 = arith.mulf %20, %19 : vector<8x13xf32>
      %22 = arith.addf %arg9, %21 : vector<8x13xf32>
      %cst_18 = arith.constant 0.000000e+00 : f32
      %23 = vector.broadcast %cst_18 : f32 to vector<8x13xf32>
      %24 = arith.maximumf %22, %23 : vector<8x13xf32>
      %cst_19 = arith.constant dense<0.000000e+00> : vector<8x128xf32>
      %25 = tpu.matmul %24, %0, %cst_19 {dimension_numbers = #tpu.dot_dimension_numbers<[1], [0], [0], [1], [0, 0, 1, 1], [], []>} : vector<8x13xf32>, vector<13x128xf32>, vector<8x128xf32> -> vector<8x128xf32>
      %26 = vector.broadcast %1 : vector<1x128xf32> to vector<8x128xf32>
      %27 = arith.addf %25, %26 : vector<8x128xf32>
      %28 = math.tanh %27 : vector<8x128xf32>
      %29 = arith.mulf %28, %11 : vector<8x128xf32>
      %cst_20 = arith.constant dense<0.000000e+00> : vector<8x13xf32>
      %30 = tpu.matmul %29, %3, %cst_20 {dimension_numbers = #tpu.dot_dimension_numbers<[1], [0], [0], [1], [0, 0, 1, 1], [], []>} : vector<8x128xf32>, vector<128x13xf32>, vector<8x13xf32> -> vector<8x13xf32>
      %cst_21 = arith.constant 5.000000e-01 : f32
      %31 = vector.broadcast %cst_21 : f32 to vector<8x13xf32>
      %32 = arith.mulf %31, %30 : vector<8x13xf32>
      %33 = arith.addf %arg9, %32 : vector<8x13xf32>
      %cst_22 = arith.constant 0.000000e+00 : f32
      %34 = vector.broadcast %cst_22 : f32 to vector<8x13xf32>
      %35 = arith.maximumf %33, %34 : vector<8x13xf32>
      %cst_23 = arith.constant dense<0.000000e+00> : vector<8x128xf32>
      %36 = tpu.matmul %35, %0, %cst_23 {dimension_numbers = #tpu.dot_dimension_numbers<[1], [0], [0], [1], [0, 0, 1, 1], [], []>} : vector<8x13xf32>, vector<13x128xf32>, vector<8x128xf32> -> vector<8x128xf32>
      %37 = vector.broadcast %1 : vector<1x128xf32> to vector<8x128xf32>
      %38 = arith.addf %36, %37 : vector<8x128xf32>
      %39 = math.tanh %38 : vector<8x128xf32>
      %40 = arith.mulf %39, %11 : vector<8x128xf32>
      %cst_24 = arith.constant dense<0.000000e+00> : vector<8x13xf32>
      %41 = tpu.matmul %40, %3, %cst_24 {dimension_numbers = #tpu.dot_dimension_numbers<[1], [0], [0], [1], [0, 0, 1, 1], [], []>} : vector<8x128xf32>, vector<128x13xf32>, vector<8x13xf32> -> vector<8x13xf32>
      %42 = arith.addf %arg9, %41 : vector<8x13xf32>
      %cst_25 = arith.constant 0.000000e+00 : f32
      %43 = vector.broadcast %cst_25 : f32 to vector<8x13xf32>
      %44 = arith.maximumf %42, %43 : vector<8x13xf32>
      %cst_26 = arith.constant dense<0.000000e+00> : vector<8x128xf32>
      %45 = tpu.matmul %44, %0, %cst_26 {dimension_numbers = #tpu.dot_dimension_numbers<[1], [0], [0], [1], [0, 0, 1, 1], [], []>} : vector<8x13xf32>, vector<13x128xf32>, vector<8x128xf32> -> vector<8x128xf32>
      %46 = vector.broadcast %1 : vector<1x128xf32> to vector<8x128xf32>
      %47 = arith.addf %45, %46 : vector<8x128xf32>
      %48 = math.tanh %47 : vector<8x128xf32>
      %49 = arith.mulf %48, %11 : vector<8x128xf32>
      %cst_27 = arith.constant dense<0.000000e+00> : vector<8x13xf32>
      %50 = tpu.matmul %49, %3, %cst_27 {dimension_numbers = #tpu.dot_dimension_numbers<[1], [0], [0], [1], [0, 0, 1, 1], [], []>} : vector<8x128xf32>, vector<128x13xf32>, vector<8x13xf32> -> vector<8x13xf32>
      %cst_28 = arith.constant 2.000000e+00 : f32
      %51 = vector.broadcast %cst_28 : f32 to vector<8x13xf32>
      %52 = arith.mulf %51, %30 : vector<8x13xf32>
      %53 = arith.addf %19, %52 : vector<8x13xf32>
      %cst_29 = arith.constant 2.000000e+00 : f32
      %54 = vector.broadcast %cst_29 : f32 to vector<8x13xf32>
      %55 = arith.mulf %54, %41 : vector<8x13xf32>
      %56 = arith.addf %53, %55 : vector<8x13xf32>
      %57 = arith.addf %56, %50 : vector<8x13xf32>
      %cst_30 = arith.constant 0.166666672 : f32
      %58 = vector.broadcast %cst_30 : f32 to vector<8x13xf32>
      %59 = arith.mulf %58, %57 : vector<8x13xf32>
      %60 = arith.addf %arg9, %59 : vector<8x13xf32>
      %cst_31 = arith.constant 0.000000e+00 : f32
      %61 = vector.broadcast %cst_31 : f32 to vector<8x13xf32>
      %62 = arith.maximumf %60, %61 : vector<8x13xf32>
      %cst_32 = arith.constant dense<0.000000e+00> : vector<8x128xf32>
      %63 = tpu.matmul %62, %0, %cst_32 {dimension_numbers = #tpu.dot_dimension_numbers<[1], [0], [0], [1], [0, 0, 1, 1], [], []>} : vector<8x13xf32>, vector<13x128xf32>, vector<8x128xf32> -> vector<8x128xf32>
      %64 = vector.broadcast %1 : vector<1x128xf32> to vector<8x128xf32>
      %65 = arith.addf %63, %64 : vector<8x128xf32>
      %66 = math.tanh %65 : vector<8x128xf32>
      %67 = arith.mulf %66, %11 : vector<8x128xf32>
      %cst_33 = arith.constant dense<0.000000e+00> : vector<8x13xf32>
      %68 = tpu.matmul %67, %3, %cst_33 {dimension_numbers = #tpu.dot_dimension_numbers<[1], [0], [0], [1], [0, 0, 1, 1], [], []>} : vector<8x128xf32>, vector<128x13xf32>, vector<8x13xf32> -> vector<8x13xf32>
      %cst_34 = arith.constant 5.000000e-01 : f32
      %69 = vector.broadcast %cst_34 : f32 to vector<8x13xf32>
      %70 = arith.mulf %69, %68 : vector<8x13xf32>
      %71 = arith.addf %60, %70 : vector<8x13xf32>
      %cst_35 = arith.constant 0.000000e+00 : f32
      %72 = vector.broadcast %cst_35 : f32 to vector<8x13xf32>
      %73 = arith.maximumf %71, %72 : vector<8x13xf32>
      %cst_36 = arith.constant dense<0.000000e+00> : vector<8x128xf32>
      %74 = tpu.matmul %73, %0, %cst_36 {dimension_numbers = #tpu.dot_dimension_numbers<[1], [0], [0], [1], [0, 0, 1, 1], [], []>} : vector<8x13xf32>, vector<13x128xf32>, vector<8x128xf32> -> vector<8x128xf32>
      %75 = vector.broadcast %1 : vector<1x128xf32> to vector<8x128xf32>
      %76 = arith.addf %74, %75 : vector<8x128xf32>
      %77 = math.tanh %76 : vector<8x128xf32>
      %78 = arith.mulf %77, %11 : vector<8x128xf32>
      %cst_37 = arith.constant dense<0.000000e+00> : vector<8x13xf32>
      %79 = tpu.matmul %78, %3, %cst_37 {dimension_numbers = #tpu.dot_dimension_numbers<[1], [0], [0], [1], [0, 0, 1, 1], [], []>} : vector<8x128xf32>, vector<128x13xf32>, vector<8x13xf32> -> vector<8x13xf32>
      %cst_38 = arith.constant 5.000000e-01 : f32
      %80 = vector.broadcast %cst_38 : f32 to vector<8x13xf32>
      %81 = arith.mulf %80, %79 : vector<8x13xf32>
      %82 = arith.addf %60, %81 : vector<8x13xf32>
      %cst_39 = arith.constant 0.000000e+00 : f32
      %83 = vector.broadcast %cst_39 : f32 to vector<8x13xf32>
      %84 = arith.maximumf %82, %83 : vector<8x13xf32>
      %cst_40 = arith.constant dense<0.000000e+00> : vector<8x128xf32>
      %85 = tpu.matmul %84, %0, %cst_40 {dimension_numbers = #tpu.dot_dimension_numbers<[1], [0], [0], [1], [0, 0, 1, 1], [], []>} : vector<8x13xf32>, vector<13x128xf32>, vector<8x128xf32> -> vector<8x128xf32>
      %86 = vector.broadcast %1 : vector<1x128xf32> to vector<8x128xf32>
      %87 = arith.addf %85, %86 : vector<8x128xf32>
      %88 = math.tanh %87 : vector<8x128xf32>
      %89 = arith.mulf %88, %11 : vector<8x128xf32>
      %cst_41 = arith.constant dense<0.000000e+00> : vector<8x13xf32>
      %90 = tpu.matmul %89, %3, %cst_41 {dimension_numbers = #tpu.dot_dimension_numbers<[1], [0], [0], [1], [0, 0, 1, 1], [], []>} : vector<8x128xf32>, vector<128x13xf32>, vector<8x13xf32> -> vector<8x13xf32>
      %91 = arith.addf %60, %90 : vector<8x13xf32>
      %cst_42 = arith.constant 0.000000e+00 : f32
      %92 = vector.broadcast %cst_42 : f32 to vector<8x13xf32>
      %93 = arith.maximumf %91, %92 : vector<8x13xf32>
      %cst_43 = arith.constant dense<0.000000e+00> : vector<8x128xf32>
      %94 = tpu.matmul %93, %0, %cst_43 {dimension_numbers = #tpu.dot_dimension_numbers<[1], [0], [0], [1], [0, 0, 1, 1], [], []>} : vector<8x13xf32>, vector<13x128xf32>, vector<8x128xf32> -> vector<8x128xf32>
      %95 = vector.broadcast %1 : vector<1x128xf32> to vector<8x128xf32>
      %96 = arith.addf %94, %95 : vector<8x128xf32>
      %97 = math.tanh %96 : vector<8x128xf32>
      %98 = arith.mulf %97, %11 : vector<8x128xf32>
      %cst_44 = arith.constant dense<0.000000e+00> : vector<8x13xf32>
      %99 = tpu.matmul %98, %3, %cst_44 {dimension_numbers = #tpu.dot_dimension_numbers<[1], [0], [0], [1], [0, 0, 1, 1], [], []>} : vector<8x128xf32>, vector<128x13xf32>, vector<8x13xf32> -> vector<8x13xf32>
      %cst_45 = arith.constant 2.000000e+00 : f32
      %100 = vector.broadcast %cst_45 : f32 to vector<8x13xf32>
      %101 = arith.mulf %100, %79 : vector<8x13xf32>
      %102 = arith.addf %68, %101 : vector<8x13xf32>
      %cst_46 = arith.constant 2.000000e+00 : f32
      %103 = vector.broadcast %cst_46 : f32 to vector<8x13xf32>
      %104 = arith.mulf %103, %90 : vector<8x13xf32>
      %105 = arith.addf %102, %104 : vector<8x13xf32>
      %106 = arith.addf %105, %99 : vector<8x13xf32>
      %cst_47 = arith.constant 0.166666672 : f32
      %107 = vector.broadcast %cst_47 : f32 to vector<8x13xf32>
      %108 = arith.mulf %107, %106 : vector<8x13xf32>
      %109 = arith.addf %60, %108 : vector<8x13xf32>
      %cst_48 = arith.constant 0.000000e+00 : f32
      %110 = vector.broadcast %cst_48 : f32 to vector<8x13xf32>
      %111 = arith.maximumf %109, %110 : vector<8x13xf32>
      %cst_49 = arith.constant dense<0.000000e+00> : vector<8x128xf32>
      %112 = tpu.matmul %111, %0, %cst_49 {dimension_numbers = #tpu.dot_dimension_numbers<[1], [0], [0], [1], [0, 0, 1, 1], [], []>} : vector<8x13xf32>, vector<13x128xf32>, vector<8x128xf32> -> vector<8x128xf32>
      %113 = vector.broadcast %1 : vector<1x128xf32> to vector<8x128xf32>
      %114 = arith.addf %112, %113 : vector<8x128xf32>
      %115 = math.tanh %114 : vector<8x128xf32>
      %116 = arith.mulf %115, %11 : vector<8x128xf32>
      %cst_50 = arith.constant dense<0.000000e+00> : vector<8x13xf32>
      %117 = tpu.matmul %116, %3, %cst_50 {dimension_numbers = #tpu.dot_dimension_numbers<[1], [0], [0], [1], [0, 0, 1, 1], [], []>} : vector<8x128xf32>, vector<128x13xf32>, vector<8x13xf32> -> vector<8x13xf32>
      %cst_51 = arith.constant 5.000000e-01 : f32
      %118 = vector.broadcast %cst_51 : f32 to vector<8x13xf32>
      %119 = arith.mulf %118, %117 : vector<8x13xf32>
      %120 = arith.addf %109, %119 : vector<8x13xf32>
      %cst_52 = arith.constant 0.000000e+00 : f32
      %121 = vector.broadcast %cst_52 : f32 to vector<8x13xf32>
      %122 = arith.maximumf %120, %121 : vector<8x13xf32>
      %cst_53 = arith.constant dense<0.000000e+00> : vector<8x128xf32>
      %123 = tpu.matmul %122, %0, %cst_53 {dimension_numbers = #tpu.dot_dimension_numbers<[1], [0], [0], [1], [0, 0, 1, 1], [], []>} : vector<8x13xf32>, vector<13x128xf32>, vector<8x128xf32> -> vector<8x128xf32>
      %124 = vector.broadcast %1 : vector<1x128xf32> to vector<8x128xf32>
      %125 = arith.addf %123, %124 : vector<8x128xf32>
      %126 = math.tanh %125 : vector<8x128xf32>
      %127 = arith.mulf %126, %11 : vector<8x128xf32>
      %cst_54 = arith.constant dense<0.000000e+00> : vector<8x13xf32>
      %128 = tpu.matmul %127, %3, %cst_54 {dimension_numbers = #tpu.dot_dimension_numbers<[1], [0], [0], [1], [0, 0, 1, 1], [], []>} : vector<8x128xf32>, vector<128x13xf32>, vector<8x13xf32> -> vector<8x13xf32>
      %cst_55 = arith.constant 5.000000e-01 : f32
      %129 = vector.broadcast %cst_55 : f32 to vector<8x13xf32>
      %130 = arith.mulf %129, %128 : vector<8x13xf32>
      %131 = arith.addf %109, %130 : vector<8x13xf32>
      %cst_56 = arith.constant 0.000000e+00 : f32
      %132 = vector.broadcast %cst_56 : f32 to vector<8x13xf32>
      %133 = arith.maximumf %131, %132 : vector<8x13xf32>
      %cst_57 = arith.constant dense<0.000000e+00> : vector<8x128xf32>
      %134 = tpu.matmul %133, %0, %cst_57 {dimension_numbers = #tpu.dot_dimension_numbers<[1], [0], [0], [1], [0, 0, 1, 1], [], []>} : vector<8x13xf32>, vector<13x128xf32>, vector<8x128xf32> -> vector<8x128xf32>
      %135 = vector.broadcast %1 : vector<1x128xf32> to vector<8x128xf32>
      %136 = arith.addf %134, %135 : vector<8x128xf32>
      %137 = math.tanh %136 : vector<8x128xf32>
      %138 = arith.mulf %137, %11 : vector<8x128xf32>
      %cst_58 = arith.constant dense<0.000000e+00> : vector<8x13xf32>
      %139 = tpu.matmul %138, %3, %cst_58 {dimension_numbers = #tpu.dot_dimension_numbers<[1], [0], [0], [1], [0, 0, 1, 1], [], []>} : vector<8x128xf32>, vector<128x13xf32>, vector<8x13xf32> -> vector<8x13xf32>
      %140 = arith.addf %109, %139 : vector<8x13xf32>
      %cst_59 = arith.constant 0.000000e+00 : f32
      %141 = vector.broadcast %cst_59 : f32 to vector<8x13xf32>
      %142 = arith.maximumf %140, %141 : vector<8x13xf32>
      %cst_60 = arith.constant dense<0.000000e+00> : vector<8x128xf32>
      %143 = tpu.matmul %142, %0, %cst_60 {dimension_numbers = #tpu.dot_dimension_numbers<[1], [0], [0], [1], [0, 0, 1, 1], [], []>} : vector<8x13xf32>, vector<13x128xf32>, vector<8x128xf32> -> vector<8x128xf32>
      %144 = vector.broadcast %1 : vector<1x128xf32> to vector<8x128xf32>
      %145 = arith.addf %143, %144 : vector<8x128xf32>
      %146 = math.tanh %145 : vector<8x128xf32>
      %147 = arith.mulf %146, %11 : vector<8x128xf32>
      %cst_61 = arith.constant dense<0.000000e+00> : vector<8x13xf32>
      %148 = tpu.matmul %147, %3, %cst_61 {dimension_numbers = #tpu.dot_dimension_numbers<[1], [0], [0], [1], [0, 0, 1, 1], [], []>} : vector<8x128xf32>, vector<128x13xf32>, vector<8x13xf32> -> vector<8x13xf32>
      %cst_62 = arith.constant 2.000000e+00 : f32
      %149 = vector.broadcast %cst_62 : f32 to vector<8x13xf32>
      %150 = arith.mulf %149, %128 : vector<8x13xf32>
      %151 = arith.addf %117, %150 : vector<8x13xf32>
      %cst_63 = arith.constant 2.000000e+00 : f32
      %152 = vector.broadcast %cst_63 : f32 to vector<8x13xf32>
      %153 = arith.mulf %152, %139 : vector<8x13xf32>
      %154 = arith.addf %151, %153 : vector<8x13xf32>
      %155 = arith.addf %154, %148 : vector<8x13xf32>
      %cst_64 = arith.constant 0.166666672 : f32
      %156 = vector.broadcast %cst_64 : f32 to vector<8x13xf32>
      %157 = arith.mulf %156, %155 : vector<8x13xf32>
      %158 = arith.addf %109, %157 : vector<8x13xf32>
      %cst_65 = arith.constant 0.000000e+00 : f32
      %159 = vector.broadcast %cst_65 : f32 to vector<8x13xf32>
      %160 = arith.maximumf %158, %159 : vector<8x13xf32>
      %cst_66 = arith.constant dense<0.000000e+00> : vector<8x128xf32>
      %161 = tpu.matmul %160, %0, %cst_66 {dimension_numbers = #tpu.dot_dimension_numbers<[1], [0], [0], [1], [0, 0, 1, 1], [], []>} : vector<8x13xf32>, vector<13x128xf32>, vector<8x128xf32> -> vector<8x128xf32>
      %162 = vector.broadcast %1 : vector<1x128xf32> to vector<8x128xf32>
      %163 = arith.addf %161, %162 : vector<8x128xf32>
      %164 = math.tanh %163 : vector<8x128xf32>
      %165 = arith.mulf %164, %11 : vector<8x128xf32>
      %cst_67 = arith.constant dense<0.000000e+00> : vector<8x13xf32>
      %166 = tpu.matmul %165, %3, %cst_67 {dimension_numbers = #tpu.dot_dimension_numbers<[1], [0], [0], [1], [0, 0, 1, 1], [], []>} : vector<8x128xf32>, vector<128x13xf32>, vector<8x13xf32> -> vector<8x13xf32>
      %cst_68 = arith.constant 5.000000e-01 : f32
      %167 = vector.broadcast %cst_68 : f32 to vector<8x13xf32>
      %168 = arith.mulf %167, %166 : vector<8x13xf32>
      %169 = arith.addf %158, %168 : vector<8x13xf32>
      %cst_69 = arith.constant 0.000000e+00 : f32
      %170 = vector.broadcast %cst_69 : f32 to vector<8x13xf32>
      %171 = arith.maximumf %169, %170 : vector<8x13xf32>
      %cst_70 = arith.constant dense<0.000000e+00> : vector<8x128xf32>
      %172 = tpu.matmul %171, %0, %cst_70 {dimension_numbers = #tpu.dot_dimension_numbers<[1], [0], [0], [1], [0, 0, 1, 1], [], []>} : vector<8x13xf32>, vector<13x128xf32>, vector<8x128xf32> -> vector<8x128xf32>
      %173 = vector.broadcast %1 : vector<1x128xf32> to vector<8x128xf32>
      %174 = arith.addf %172, %173 : vector<8x128xf32>
      %175 = math.tanh %174 : vector<8x128xf32>
      %176 = arith.mulf %175, %11 : vector<8x128xf32>
      %cst_71 = arith.constant dense<0.000000e+00> : vector<8x13xf32>
      %177 = tpu.matmul %176, %3, %cst_71 {dimension_numbers = #tpu.dot_dimension_numbers<[1], [0], [0], [1], [0, 0, 1, 1], [], []>} : vector<8x128xf32>, vector<128x13xf32>, vector<8x13xf32> -> vector<8x13xf32>
      %cst_72 = arith.constant 5.000000e-01 : f32
      %178 = vector.broadcast %cst_72 : f32 to vector<8x13xf32>
      %179 = arith.mulf %178, %177 : vector<8x13xf32>
      %180 = arith.addf %158, %179 : vector<8x13xf32>
      %cst_73 = arith.constant 0.000000e+00 : f32
      %181 = vector.broadcast %cst_73 : f32 to vector<8x13xf32>
      %182 = arith.maximumf %180, %181 : vector<8x13xf32>
      %cst_74 = arith.constant dense<0.000000e+00> : vector<8x128xf32>
      %183 = tpu.matmul %182, %0, %cst_74 {dimension_numbers = #tpu.dot_dimension_numbers<[1], [0], [0], [1], [0, 0, 1, 1], [], []>} : vector<8x13xf32>, vector<13x128xf32>, vector<8x128xf32> -> vector<8x128xf32>
      %184 = vector.broadcast %1 : vector<1x128xf32> to vector<8x128xf32>
      %185 = arith.addf %183, %184 : vector<8x128xf32>
      %186 = math.tanh %185 : vector<8x128xf32>
      %187 = arith.mulf %186, %11 : vector<8x128xf32>
      %cst_75 = arith.constant dense<0.000000e+00> : vector<8x13xf32>
      %188 = tpu.matmul %187, %3, %cst_75 {dimension_numbers = #tpu.dot_dimension_numbers<[1], [0], [0], [1], [0, 0, 1, 1], [], []>} : vector<8x128xf32>, vector<128x13xf32>, vector<8x13xf32> -> vector<8x13xf32>
      %189 = arith.addf %158, %188 : vector<8x13xf32>
      %cst_76 = arith.constant 0.000000e+00 : f32
      %190 = vector.broadcast %cst_76 : f32 to vector<8x13xf32>
      %191 = arith.maximumf %189, %190 : vector<8x13xf32>
      %cst_77 = arith.constant dense<0.000000e+00> : vector<8x128xf32>
      %192 = tpu.matmul %191, %0, %cst_77 {dimension_numbers = #tpu.dot_dimension_numbers<[1], [0], [0], [1], [0, 0, 1, 1], [], []>} : vector<8x13xf32>, vector<13x128xf32>, vector<8x128xf32> -> vector<8x128xf32>
      %193 = vector.broadcast %1 : vector<1x128xf32> to vector<8x128xf32>
      %194 = arith.addf %192, %193 : vector<8x128xf32>
      %195 = math.tanh %194 : vector<8x128xf32>
      %196 = arith.mulf %195, %11 : vector<8x128xf32>
      %cst_78 = arith.constant dense<0.000000e+00> : vector<8x13xf32>
      %197 = tpu.matmul %196, %3, %cst_78 {dimension_numbers = #tpu.dot_dimension_numbers<[1], [0], [0], [1], [0, 0, 1, 1], [], []>} : vector<8x128xf32>, vector<128x13xf32>, vector<8x13xf32> -> vector<8x13xf32>
      %cst_79 = arith.constant 2.000000e+00 : f32
      %198 = vector.broadcast %cst_79 : f32 to vector<8x13xf32>
      %199 = arith.mulf %198, %177 : vector<8x13xf32>
      %200 = arith.addf %166, %199 : vector<8x13xf32>
      %cst_80 = arith.constant 2.000000e+00 : f32
      %201 = vector.broadcast %cst_80 : f32 to vector<8x13xf32>
      %202 = arith.mulf %201, %188 : vector<8x13xf32>
      %203 = arith.addf %200, %202 : vector<8x13xf32>
      %204 = arith.addf %203, %197 : vector<8x13xf32>
      %cst_81 = arith.constant 0.166666672 : f32
      %205 = vector.broadcast %cst_81 : f32 to vector<8x13xf32>
      %206 = arith.mulf %205, %204 : vector<8x13xf32>
      %207 = arith.addf %158, %206 : vector<8x13xf32>
      scf.yield %207 : vector<8x13xf32>
    }
    %c7_i32_9 = arith.constant 7 : i32
    %c0_10 = arith.constant 0 : index
    %c0_11 = arith.constant 0 : index
    %7 = vector.load %arg7[%c0_10, %c0_11] : memref<8x13xf32, #tpu.memory_space<vmem>>, vector<8x13xf32>
    tpu.vector_store %arg7[%c0_10, %c0_11], %6 {strides = array<i32>} : memref<8x13xf32, #tpu.memory_space<vmem>>, vector<8x13xf32>,
    return
  }
  func.func @transform_0(%arg0: i32) -> (i32, i32) {
    %c0_i32 = arith.constant 0 : i32
    %c0_i32_0 = arith.constant 0 : i32
    return %arg0, %c0_i32 : i32, i32
  }
  func.func @transform_1(%arg0: i32) -> (i32, i32, i32) {
    %c0_i32 = arith.constant 0 : i32
    %c0_i32_0 = arith.constant 0 : i32
    %c0_i32_1 = arith.constant 0 : i32
    return %c0_i32, %arg0, %c0_i32_0 : i32, i32, i32
  }
  func.func @transform_2(%arg0: i32) -> (i32, i32) {
    %c0_i32 = arith.constant 0 : i32
    %c0_i32_0 = arith.constant 0 : i32
    %c0_i32_1 = arith.constant 0 : i32
    return %c0_i32, %c0_i32_0 : i32, i32
  }
  func.func @transform_3(%arg0: i32) -> (i32, i32) {
    %c0_i32 = arith.constant 0 : i32
    %c0_i32_0 = arith.constant 0 : i32
    %c0_i32_1 = arith.constant 0 : i32
    return %c0_i32, %c0_i32_0 : i32, i32
  }
  func.func @transform_4(%arg0: i32) -> (i32, i32) {
    %c0_i32 = arith.constant 0 : i32
    %c0_i32_0 = arith.constant 0 : i32
    %c0_i32_1 = arith.constant 0 : i32
    return %c0_i32, %c0_i32_0 : i32, i32
  }
  func.func @transform_5(%arg0: i32) -> (i32, i32) {
    %c0_i32 = arith.constant 0 : i32
    %c0_i32_0 = arith.constant 0 : i32
    %c0_i32_1 = arith.constant 0 : i32
    return %c0_i32, %c0_i32_0 : i32, i32
  }
  func.func @transform_6(%arg0: i32) -> (i32, i32) {
    %c0_i32 = arith.constant 0 : i32
    %c0_i32_0 = arith.constant 0 : i32
    return %arg0, %c0_i32 : i32, i32
  }
}

</mosaic_0001>

<bundles_post_ra>
// kernel: tpu_custom_call.1
= control target key start
LH: loop header
LB: loop body
LE: loop exit
PB: predicated region body
PF: predicated region fallthrough
CT: control target
= control target key end

     0   :  { %11 = vsyncpa [#allocation3], 0  ;;  %s4275_s10 = smov 0   ;;  %s4809_s0 = inlined_call_operand.vmem [shape: f32[8,13], index: 0, kind: input, shape index: {}]   ;;  %s4810_s1 = inlined_call_operand.vmem [shape: f32[7,8,4], index: 1, kind: input, shape index: {}]   ;;  %s4811_s2 = inlined_call_operand.vmem [shape: f32[13,128], index: 2, kind: input, shape index: {}]   ;;  %s4812_s3 = inlined_call_operand.vmem [shape: f32[1,128], index: 3, kind: input, shape index: {}]   ;;  %s4813_s4 = inlined_call_operand.vmem [shape: f32[4,128], index: 4, kind: input, shape index: {}]   ;;  %s4814_s5 = inlined_call_operand.vmem [shape: f32[128,13], index: 5, kind: input, shape index: {}]   ;;  %s4815_s6 = inlined_call_operand.hbm [shape: f32[8,13], index: 6, kind: output, shape index: {}]  }
   0x1   :  { %v4173_v0 = vld [vmem:[%s4811_s2] sm:$0xff]  ;;  %v4178_v1 = vld [vmem:[%s4811_s2 + $0x8] sm:$0x1f]  ;;  %v4203_v6 = vld [vmem:[%s4814_s5 + $0x10] sm:$0xff] }
   0x2   :  { %v4183_v2 = vld [vmem:[%s4812_s3] ss:$0 sm:$0xff]  ;;  %v4198_v5 = vld [vmem:[%s4814_s5 + $0x8] sm:$0xff]  ;;  %v4208_v7 = vld [vmem:[%s4814_s5 + $0x18] sm:$0xff] }
   0x3   :  { %v4188_v3 = vld [vmem:[%s4813_s4] sm:$0xf]  ;;  %v4218_v9 = vld [vmem:[%s4814_s5 + $0x28] sm:$0xff]  ;;  %v4223_v10 = vld [vmem:[%s4814_s5 + $0x30] sm:$0xff] }
   0x4   :  { %v4193_v4 = vld [vmem:[%s4814_s5] sm:$0xff]  ;;  %v4228_v11 = vld [vmem:[%s4814_s5 + $0x38] sm:$0xff]  ;;  %v4238_v13 = vld [vmem:[%s4814_s5 + $0x48] sm:$0xff] }
   0x5   :  { %v4213_v8 = vld [vmem:[%s4814_s5 + $0x20] sm:$0xff]  ;;  %v4243_v14 = vld [vmem:[%s4814_s5 + $0x50] sm:$0xff]  ;;  %v4248_v15 = vld [vmem:[%s4814_s5 + $0x58] sm:$0xff] }
   0x6   :  { %v4233_v12 = vld [vmem:[%s4814_s5 + $0x40] sm:$0xff]  ;;  %v4258_v17 = vld [vmem:[%s4814_s5 + $0x68] sm:$0xff]  ;;  %v4263_v18 = vld [vmem:[%s4814_s5 + $0x70] sm:$0xff] }
   0x7   :  { %v4253_v16 = vld [vmem:[%s4814_s5 + $0x60] sm:$0xff]  ;;  %v4268_v19 = vld [vmem:[%s4814_s5 + $0x78] sm:$0xff] }
   0x8   :  { %v44_v20 = vld [vmem:[%s4809_s0] sm:$0xff]  }
   0x9 LB: > { %vm59_vm0 = vcmask 1043456   ;;  %v4130_v21 = vmov 0.0   ;;  %vm4131_vm1 = vmmov 0   ;;  %vm144_vm2 = vcmask 1044480   ;;  %s2554_s0 = sshll.u32 %s4128_s10, 3  ;;  %s50_s10 = sadd.s32 1, %s4128_s10   ;;  %s4128_s10 = sphi %s4275_s10, %s50_s10   ;;  %v4124_v20 = vphi %v44_v20, %v4818_v20  }
   0xa   : > { %2912 = vmatprep.subr.mxu0 %v4130_v21  ;;  %2914 = vmatprep.mubr.msk.f32.mxu0 %vm4131_vm1, %v4130_v21  ;;  %v4288_v22 = vpack.c.bf16 %v4178_v1, %v4173_v0  ;;  %vm55_vm3 = vcmask 31744   ;;  %vm4132_vm4 = vmmov 1   ;;  %v4133_v24 = vmov 0.0|0.0   ;;  %s53_s11 = scalar_lea.vmem %s4810_s1, %s2554_s0  ;;  %p47_p0 = scmp.ge.s32.totalorder %s50_s10, 7  }
   0xb   : > { %2913 = vmatpush3.msk.msra.mxu0 %vm59_vm0, %v4188_v3  ;;  %vm4292_vm5 = vmpackc.low %vm144_vm2, %vm4132_vm4  ;;  %3617 = vmatprep.subr.bf16.mxu1 %v4133_v24  ;;  %v54_v25 = vld [vmem:[%s53_s11] sm:$0xff]  ;;  %v133_v26 = vmax.f32 %v4124_v20, 0.0  ;;  %vm140_vm6 = vcmask 105472   ;;  %v4315_v27 = vpack.c.bf16 %v4198_v5, %v4193_v4  ;;  %v4322_v28 = vpack.c.bf16 %v4208_v7, %v4203_v6  ;;  %s4134_s12 = smov (%p47_p0), [#allocation2]  }
   0xc   : > { %3589 = vmatprep.subr.bf16.mxu0 %v4133_v24  ;;  %3620 = vmatpush3.bf16.msk.msra.mxu1 %vm4292_vm5, %v4288_v22  ;;  %v4330_v29 = vpack.c.bf16 %v4218_v9, %v4213_v8  ;;  %v4337_v30 = vpack.c.bf16 %v4228_v11, %v4223_v10  ;;  %v4343_v31 = vpack.c.bf16 %v4238_v13, %v4233_v12  ;;  %s2536_s13 = sshll.u32 (%p47_p0), %s4134_s12, 4  ;;  %s2537_s13 = int_to_ptr.vmem [resolvable:$true] %s2536_s13 }
   0xd   : > { %2963 = vmatprep.mubr.msk.f32.mxu1 %vm4131_vm1, %v4130_v21  ;;  %3621 = vmatprep.subr.bf16.mxu1 %v4133_v24  ;;  %v4349_v32 = vpack.c.bf16 %v4248_v15, %v4243_v14  ;;  %v4354_v33 = vpack.c.bf16 %v4258_v17, %v4253_v16  ;;  %v4360_v34 = vpack.c.bf16 %v4268_v19, %v4263_v18  ;;  %s4090_s14 = scalar_lea.vmem (%p47_p0), %s2537_s13, 128  ;;  %p4095_p2 = scmp.lt.s32.totalorder (%p47_p0), %s2537_s13, %s2537_s13 }
   0xe   : > { %2915 = vmatmul.mubr.msk.f32.vlgmr.msra.gmra.mrb[0].mxu0 %vm55_vm3, %v54_v25  ;;  %p4091_p1 = scmp.ne.s32.totalorder (%p47_p0), %s2537_s13, %s4090_s14  ;;  %p4096_p3 = scmp.lt.s32.totalorder (%p47_p0), %s4090_s14, %s4090_s14 }
   0xf   : > { %3592 = vmatpush3.bf16.msk.msra.mxu0 %vm4292_vm5, %v4288_v22  ;;  %2921 = vmatprep.mubr.msk.f32.mxu0 %vm4131_vm1, %v4130_v21 }
  0x10   : > { %3593 = vmatprep.subr.bf16.mxu0 %v4133_v24  ;;  %p4097_p4 = por (%p47_p0), %p4096_p3, %p4095_p2 }
  0x12   : > { %2922 = vmatmul.mubr.msk.f32.vlgmr.msra.gmra.mrb[2].mxu0 %vm140_vm6, %v133_v26  ;;  %p4098_p5 = pnand (%p47_p0), %p4097_p4, %p4091_p1 }
  0x13   : > { %3595 = vmatpush3.bf16.msra.mxu0 %v4315_v27  ;;  %2956 = vmatprep.mubr.msk.f32.mxu0 %vm4131_vm1, %v4130_v21 }
  0x14   : > { %3596 = vmatprep.subr.bf16.mxu0 %v4133_v24 }
  0x17   : > { %3598 = vmatpush3.bf16.msra.mxu0 %v4322_v28 }
  0x18   : > { %3599 = vmatprep.subr.bf16.mxu0 %v4133_v24 }
  0x1b   : > { %3601 = vmatpush3.bf16.msra.mxu0 %v4330_v29 }
  0x1c   : > { %3602 = vmatprep.subr.bf16.mxu0 %v4133_v24 }
  0x1f   : > { %3604 = vmatpush3.bf16.msra.mxu0 %v4337_v30 }
  0x20   : > { %3605 = vmatprep.subr.bf16.mxu0 %v4133_v24 }
  0x23   : > { %3607 = vmatpush3.bf16.msra.mxu0 %v4343_v31 }
  0x24   : > { %3608 = vmatprep.subr.bf16.mxu0 %v4133_v24 }
  0x27   : > { %3610 = vmatpush3.bf16.msra.mxu0 %v4349_v32 }
  0x28   : > { %3611 = vmatprep.subr.bf16.mxu0 %v4133_v24 }
  0x2b   : > { %3613 = vmatpush3.bf16.msra.mxu0 %v4354_v33 }
  0x2c   : > { %3614 = vmatprep.subr.bf16.mxu0 %v4133_v24 }
  0x2f   : > { %3616 = vmatpush3.bf16.msra.mxu0 %v4360_v34 }
  0x30   : > { %3645 = vmatprep.subr.bf16.mxu0 %v4133_v24 }
  0xe1   : > { %v4365_v35 = vpop.f32.mrb[0].mxu0 }
  0xe2   : > { %v2916_v36 = vpop.f32.mrb[1].mxu0 }
  0xe5   : > { %v214_v37 = vpop.f32.mrb[2].mxu0 }
  0xe6   : > { %v215_v38 = vadd.f32 %v4183_v2, %v214_v37  ;;  %v2923_v39 = vpop.f32.mrb[3].mxu0 }
  0xe8   : > { %4058 = vtanh.f32 %v215_v38 }
  0xf2   : > { %v4059_v40 = vpop.eup %4058 }
  0xf3   : > { %v219_v41 = vmul.f32 %v4059_v40, %v4365_v35 }
  0xf5   : > { %2957 = vmatmul.mubr.f32.vlgmr.msra.gmra.mrb[4].mxu0 %v219_v41 }
  0xf6   : > { %3648 = vmatpush3.bf16.msk.msra.mxu0 %vm4292_vm5, %v4288_v22  ;;  %3005 = vmatprep.mubr.msk.f32.mxu0 %vm4131_vm1, %v4130_v21 }
  0xf7   : > { %3649 = vmatprep.subr.bf16.mxu0 %v4133_v24 }
 0x1c8   : > { %v286_v42 = vpop.f32.mrb[4].mxu0 }
 0x1c9   : > { %v290_v43 = vmul.f32 0.5, %v286_v42  ;;  %v2958_v44 = vpop.f32.mrb[5].mxu0 }
 0x1cb   : > { %v291_v45 = vadd.f32 %v4124_v20, %v290_v43 }
 0x1cd   : > { %v292_v46 = vmax.f32 %v291_v45, 0.0 }
 0x1cf   : > { %2964 = vmatmul.mubr.msk.f32.vlgmr.msra.gmra.mrb[0].mxu1 %vm140_vm6, %v292_v46 }
 0x1d0   : > { %3623 = vmatpush3.bf16.msra.mxu1 %v4315_v27  ;;  %2998 = vmatprep.mubr.msk.f32.mxu1 %vm4131_vm1, %v4130_v21 }
 0x1d1   : > { %3624 = vmatprep.subr.bf16.mxu1 %v4133_v24 }
 0x1d4   : > { %3626 = vmatpush3.bf16.msra.mxu1 %v4322_v28 }
 0x1d5   : > { %3627 = vmatprep.subr.bf16.mxu1 %v4133_v24 }
 0x1d8   : > { %3629 = vmatpush3.bf16.msra.mxu1 %v4330_v29 }
 0x1d9   : > { %3630 = vmatprep.subr.bf16.mxu1 %v4133_v24 }
 0x1dc   : > { %3632 = vmatpush3.bf16.msra.mxu1 %v4337_v30 }
 0x1dd   : > { %3633 = vmatprep.subr.bf16.mxu1 %v4133_v24 }
 0x1e0   : > { %3635 = vmatpush3.bf16.msra.mxu1 %v4343_v31 }
 0x1e1   : > { %3636 = vmatprep.subr.bf16.mxu1 %v4133_v24 }
 0x1e4   : > { %3638 = vmatpush3.bf16.msra.mxu1 %v4349_v32 }
 0x1e5   : > { %3639 = vmatprep.subr.bf16.mxu1 %v4133_v24 }
 0x1e8   : > { %3641 = vmatpush3.bf16.msra.mxu1 %v4354_v33 }
 0x1e9   : > { %3642 = vmatprep.subr.bf16.mxu1 %v4133_v24 }
 0x1ec   : > { %3644 = vmatpush3.bf16.msra.mxu1 %v4360_v34 }
 0x1ed   : > { %3673 = vmatprep.subr.bf16.mxu1 %v4133_v24 }
 0x2a2   : > { %v362_v47 = vpop.f32.mrb[0].mxu1 }
 0x2a3   : > { %v363_v48 = vadd.f32 %v4183_v2, %v362_v47  ;;  %v2965_v49 = vpop.f32.mrb[1].mxu1 }
 0x2a5   : > { %4060 = vtanh.f32 %v363_v48 }
 0x2af   : > { %v4061_v50 = vpop.eup %4060 }
 0x2b0   : > { %v367_v51 = vmul.f32 %v4061_v50, %v4365_v35 }
 0x2b2   : > { %2999 = vmatmul.mubr.f32.vlgmr.msra.gmra.mrb[2].mxu1 %v367_v51 }
 0x2b3   : > { %3676 = vmatpush3.bf16.msk.msra.mxu1 %vm4292_vm5, %v4288_v22  ;;  %3047 = vmatprep.mubr.msk.f32.mxu1 %vm4131_vm1, %v4130_v21 }
 0x2b4   : > { %3677 = vmatprep.subr.bf16.mxu1 %v4133_v24 }
 0x385   : > { %v434_v52 = vpop.f32.mrb[2].mxu1 }
 0x386   : > { %v438_v53 = vmul.f32 0.5, %v434_v52  ;;  %v733_v54 = vmul.f32 2.0, %v434_v52  ;;  %v3000_v55 = vpop.f32.mrb[3].mxu1 }
 0x388   : > { %v439_v56 = vadd.f32 %v4124_v20, %v438_v53  ;;  %v734_v57 = vadd.f32 %v733_v54, %v286_v42 }
 0x38a   : > { %v440_v58 = vmax.f32 %v439_v56, 0.0 }
 0x38c   : > { %3006 = vmatmul.mubr.msk.f32.vlgmr.msra.gmra.mrb[6].mxu0 %vm140_vm6, %v440_v58 }
 0x38d   : > { %3651 = vmatpush3.bf16.msra.mxu0 %v4315_v27  ;;  %3040 = vmatprep.mubr.msk.f32.mxu0 %vm4131_vm1, %v4130_v21 }
 0x38e   : > { %3652 = vmatprep.subr.bf16.mxu0 %v4133_v24 }
 0x391   : > { %3654 = vmatpush3.bf16.msra.mxu0 %v4322_v28 }
 0x392   : > { %3655 = vmatprep.subr.bf16.mxu0 %v4133_v24 }
 0x395   : > { %3657 = vmatpush3.bf16.msra.mxu0 %v4330_v29 }
 0x396   : > { %3658 = vmatprep.subr.bf16.mxu0 %v4133_v24 }
 0x399   : > { %3660 = vmatpush3.bf16.msra.mxu0 %v4337_v30 }
 0x39a   : > { %3661 = vmatprep.subr.bf16.mxu0 %v4133_v24 }
 0x39d   : > { %3663 = vmatpush3.bf16.msra.mxu0 %v4343_v31 }
 0x39e   : > { %3664 = vmatprep.subr.bf16.mxu0 %v4133_v24 }
 0x3a1   : > { %3666 = vmatpush3.bf16.msra.mxu0 %v4349_v32 }
 0x3a2   : > { %3667 = vmatprep.subr.bf16.mxu0 %v4133_v24 }
 0x3a5   : > { %3669 = vmatpush3.bf16.msra.mxu0 %v4354_v33 }
 0x3a6   : > { %3670 = vmatprep.subr.bf16.mxu0 %v4133_v24 }
 0x3a9   : > { %3672 = vmatpush3.bf16.msra.mxu0 %v4360_v34 }
 0x3aa   : > { %3701 = vmatprep.subr.bf16.mxu0 %v4133_v24 }
 0x45f   : > { %v510_v59 = vpop.f32.mrb[6].mxu0 }
 0x460   : > { %v511_v60 = vadd.f32 %v4183_v2, %v510_v59  ;;  %v3007_v61 = vpop.f32.mrb[7].mxu0 }
 0x462   : > { %4062 = vtanh.f32 %v511_v60 }
 0x46c   : > { %v4063_v62 = vpop.eup %4062 }
 0x46d   : > { %v515_v63 = vmul.f32 %v4063_v62, %v4365_v35 }
 0x46f   : > { %3041 = vmatmul.mubr.f32.vlgmr.msra.gmra.mrb[8].mxu0 %v515_v63 }
 0x470   : > { %3704 = vmatpush3.bf16.msk.msra.mxu0 %vm4292_vm5, %v4288_v22  ;;  %3089 = vmatprep.mubr.msk.f32.mxu0 %vm4131_vm1, %v4130_v21 }
 0x471   : > { %3705 = vmatprep.subr.bf16.mxu0 %v4133_v24 }
 0x542   : > { %v582_v25 = vpop.f32.mrb[8].mxu0 }
 0x543   : > { %v586_v26 = vadd.f32 %v4124_v20, %v582_v25  ;;  %v735_v36 = vmul.f32 2.0, %v582_v25  ;;  %v3042_v37 = vpop.f32.mrb[9].mxu0 }
 0x545   : > { %v587_v38 = vmax.f32 %v586_v26, 0.0  ;;  %v736_v39 = vadd.f32 %v735_v36, %v734_v57 }
 0x547   : > { %3048 = vmatmul.mubr.msk.f32.vlgmr.msra.gmra.mrb[4].mxu1 %vm140_vm6, %v587_v38 }
 0x548   : > { %3679 = vmatpush3.bf16.msra.mxu1 %v4315_v27  ;;  %3082 = vmatprep.mubr.msk.f32.mxu1 %vm4131_vm1, %v4130_v21 }
 0x549   : > { %3680 = vmatprep.subr.bf16.mxu1 %v4133_v24 }
 0x54c   : > { %3682 = vmatpush3.bf16.msra.mxu1 %v4322_v28 }
 0x54d   : > { %3683 = vmatprep.subr.bf16.mxu1 %v4133_v24 }
 0x550   : > { %3685 = vmatpush3.bf16.msra.mxu1 %v4330_v29 }
 0x551   : > { %3686 = vmatprep.subr.bf16.mxu1 %v4133_v24 }
 0x554   : > { %3688 = vmatpush3.bf16.msra.mxu1 %v4337_v30 }
 0x555   : > { %3689 = vmatprep.subr.bf16.mxu1 %v4133_v24 }
 0x558   : > { %3691 = vmatpush3.bf16.msra.mxu1 %v4343_v31 }
 0x559   : > { %3692 = vmatprep.subr.bf16.mxu1 %v4133_v24 }
 0x55c   : > { %3694 = vmatpush3.bf16.msra.mxu1 %v4349_v32 }
 0x55d   : > { %3695 = vmatprep.subr.bf16.mxu1 %v4133_v24 }
 0x560   : > { %3697 = vmatpush3.bf16.msra.mxu1 %v4354_v33 }
 0x561   : > { %3698 = vmatprep.subr.bf16.mxu1 %v4133_v24 }
 0x564   : > { %3700 = vmatpush3.bf16.msra.mxu1 %v4360_v34 }
 0x565   : > { %3729 = vmatprep.subr.bf16.mxu1 %v4133_v24 }
 0x61a   : > { %v657_v40 = vpop.f32.mrb[4].mxu1 }
 0x61b   : > { %v658_v41 = vadd.f32 %v4183_v2, %v657_v40  ;;  %v3049_v42 = vpop.f32.mrb[5].mxu1 }
 0x61d   : > { %4064 = vtanh.f32 %v658_v41 }
 0x627   : > { %v4065_v43 = vpop.eup %4064 }
 0x628   : > { %v662_v44 = vmul.f32 %v4065_v43, %v4365_v35 }
 0x62a   : > { %3083 = vmatmul.mubr.f32.vlgmr.msra.gmra.mrb[6].mxu1 %v662_v44 }
 0x62b   : > { %3732 = vmatpush3.bf16.msk.msra.mxu1 %vm4292_vm5, %v4288_v22  ;;  %3131 = vmatprep.mubr.msk.f32.mxu1 %vm4131_vm1, %v4130_v21 }
 0x62c   : > { %3733 = vmatprep.subr.bf16.mxu1 %v4133_v24 }
 0x6fd   : > { %v729_v45 = vpop.f32.mrb[6].mxu1 }
 0x6fe   : > { %v737_v46 = vadd.f32 %v736_v39, %v729_v45  ;;  %v3084_v47 = vpop.f32.mrb[7].mxu1 }
 0x700   : > { %v738_v48 = vmul.f32 0.16666667, %v737_v46 }
 0x702   : > { %v4460_v49 = vadd.f32 %v4124_v20, %v738_v48 }
 0x704   : > { %v740_v50 = vmax.f32 %v4460_v49, 0.0 }
 0x706   : > { %3090 = vmatmul.mubr.msk.f32.vlgmr.msra.gmra.mrb[10].mxu0 %vm140_vm6, %v740_v50 }
 0x707   : > { %3707 = vmatpush3.bf16.msra.mxu0 %v4315_v27  ;;  %3124 = vmatprep.mubr.msk.f32.mxu0 %vm4131_vm1, %v4130_v21 }
 0x708   : > { %3708 = vmatprep.subr.bf16.mxu0 %v4133_v24 }
 0x70b   : > { %3710 = vmatpush3.bf16.msra.mxu0 %v4322_v28 }
 0x70c   : > { %3711 = vmatprep.subr.bf16.mxu0 %v4133_v24 }
 0x70f   : > { %3713 = vmatpush3.bf16.msra.mxu0 %v4330_v29 }
 0x710   : > { %3714 = vmatprep.subr.bf16.mxu0 %v4133_v24 }
 0x713   : > { %3716 = vmatpush3.bf16.msra.mxu0 %v4337_v30 }
 0x714   : > { %3717 = vmatprep.subr.bf16.mxu0 %v4133_v24 }
 0x717   : > { %3719 = vmatpush3.bf16.msra.mxu0 %v4343_v31 }
 0x718   : > { %3720 = vmatprep.subr.bf16.mxu0 %v4133_v24 }
 0x71b   : > { %3722 = vmatpush3.bf16.msra.mxu0 %v4349_v32 }
 0x71c   : > { %3723 = vmatprep.subr.bf16.mxu0 %v4133_v24 }
 0x71f   : > { %3725 = vmatpush3.bf16.msra.mxu0 %v4354_v33 }
 0x720   : > { %3726 = vmatprep.subr.bf16.mxu0 %v4133_v24 }
 0x723   : > { %3728 = vmatpush3.bf16.msra.mxu0 %v4360_v34 }
 0x724   : > { %3757 = vmatprep.subr.bf16.mxu0 %v4133_v24 }
 0x7d9   : > { %v810_v20 = vpop.f32.mrb[10].mxu0 }
 0x7da   : > { %v811_v51 = vadd.f32 %v4183_v2, %v810_v20  ;;  %v3091_v52 = vpop.f32.mrb[11].mxu0 }
 0x7dc   : > { %4066 = vtanh.f32 %v811_v51 }
 0x7e6   : > { %v4067_v53 = vpop.eup %4066 }
 0x7e7   : > { %v815_v54 = vmul.f32 %v4067_v53, %v4365_v35 }
 0x7e9   : > { %3125 = vmatmul.mubr.f32.vlgmr.msra.gmra.mrb[12].mxu0 %v815_v54 }
 0x7ea   : > { %3760 = vmatpush3.bf16.msk.msra.mxu0 %vm4292_vm5, %v4288_v22  ;;  %3173 = vmatprep.mubr.msk.f32.mxu0 %vm4131_vm1, %v4130_v21 }
 0x7eb   : > { %3761 = vmatprep.subr.bf16.mxu0 %v4133_v24 }
 0x8bc   : > { %v882_v55 = vpop.f32.mrb[12].mxu0 }
 0x8bd   : > { %v886_v56 = vmul.f32 0.5, %v882_v55  ;;  %v3126_v57 = vpop.f32.mrb[13].mxu0 }
 0x8bf   : > { %v887_v58 = vadd.f32 %v886_v56, %v4460_v49 }
 0x8c1   : > { %v888_v59 = vmax.f32 %v887_v58, 0.0 }
 0x8c3   : > { %3132 = vmatmul.mubr.msk.f32.vlgmr.msra.gmra.mrb[8].mxu1 %vm140_vm6, %v888_v59 }
 0x8c4   : > { %3735 = vmatpush3.bf16.msra.mxu1 %v4315_v27  ;;  %3166 = vmatprep.mubr.msk.f32.mxu1 %vm4131_vm1, %v4130_v21 }
 0x8c5   : > { %3736 = vmatprep.subr.bf16.mxu1 %v4133_v24 }
 0x8c8   : > { %3738 = vmatpush3.bf16.msra.mxu1 %v4322_v28 }
 0x8c9   : > { %3739 = vmatprep.subr.bf16.mxu1 %v4133_v24 }
 0x8cc   : > { %3741 = vmatpush3.bf16.msra.mxu1 %v4330_v29 }
 0x8cd   : > { %3742 = vmatprep.subr.bf16.mxu1 %v4133_v24 }
 0x8d0   : > { %3744 = vmatpush3.bf16.msra.mxu1 %v4337_v30 }
 0x8d1   : > { %3745 = vmatprep.subr.bf16.mxu1 %v4133_v24 }
 0x8d4   : > { %3747 = vmatpush3.bf16.msra.mxu1 %v4343_v31 }
 0x8d5   : > { %3748 = vmatprep.subr.bf16.mxu1 %v4133_v24 }
 0x8d8   : > { %3750 = vmatpush3.bf16.msra.mxu1 %v4349_v32 }
 0x8d9   : > { %3751 = vmatprep.subr.bf16.mxu1 %v4133_v24 }
 0x8dc   : > { %3753 = vmatpush3.bf16.msra.mxu1 %v4354_v33 }
 0x8dd   : > { %3754 = vmatprep.subr.bf16.mxu1 %v4133_v24 }
 0x8e0   : > { %3756 = vmatpush3.bf16.msra.mxu1 %v4360_v34 }
 0x8e1   : > { %3785 = vmatprep.subr.bf16.mxu1 %v4133_v24 }
 0x996   : > { %v958_v60 = vpop.f32.mrb[8].mxu1 }
 0x997   : > { %v959_v61 = vadd.f32 %v4183_v2, %v958_v60  ;;  %v3133_v62 = vpop.f32.mrb[9].mxu1 }
 0x999   : > { %4068 = vtanh.f32 %v959_v61 }
 0x9a3   : > { %v4069_v63 = vpop.eup %4068 }
 0x9a4   : > { %v963_v25 = vmul.f32 %v4069_v63, %v4365_v35 }
 0x9a6   : > { %3167 = vmatmul.mubr.f32.vlgmr.msra.gmra.mrb[10].mxu1 %v963_v25 }
 0x9a7   : > { %3788 = vmatpush3.bf16.msk.msra.mxu1 %vm4292_vm5, %v4288_v22  ;;  %3215 = vmatprep.mubr.msk.f32.mxu1 %vm4131_vm1, %v4130_v21 }
 0x9a8   : > { %3789 = vmatprep.subr.bf16.mxu1 %v4133_v24 }
 0xa79   : > { %v1030_v26 = vpop.f32.mrb[10].mxu1 }
 0xa7a   : > { %v1034_v36 = vmul.f32 0.5, %v1030_v26  ;;  %v1329_v37 = vmul.f32 2.0, %v1030_v26  ;;  %v3168_v38 = vpop.f32.mrb[11].mxu1 }
 0xa7c   : > { %v1035_v39 = vadd.f32 %v1034_v36, %v4460_v49  ;;  %v1330_v40 = vadd.f32 %v1329_v37, %v882_v55 }
 0xa7e   : > { %v1036_v41 = vmax.f32 %v1035_v39, 0.0 }
 0xa80   : > { %3174 = vmatmul.mubr.msk.f32.vlgmr.msra.gmra.mrb[14].mxu0 %vm140_vm6, %v1036_v41 }
 0xa81   : > { %3763 = vmatpush3.bf16.msra.mxu0 %v4315_v27  ;;  %3208 = vmatprep.mubr.msk.f32.mxu0 %vm4131_vm1, %v4130_v21 }
 0xa82   : > { %3764 = vmatprep.subr.bf16.mxu0 %v4133_v24 }
 0xa85   : > { %3766 = vmatpush3.bf16.msra.mxu0 %v4322_v28 }
 0xa86   : > { %3767 = vmatprep.subr.bf16.mxu0 %v4133_v24 }
 0xa89   : > { %3769 = vmatpush3.bf16.msra.mxu0 %v4330_v29 }
 0xa8a   : > { %3770 = vmatprep.subr.bf16.mxu0 %v4133_v24 }
 0xa8d   : > { %3772 = vmatpush3.bf16.msra.mxu0 %v4337_v30 }
 0xa8e   : > { %3773 = vmatprep.subr.bf16.mxu0 %v4133_v24 }
 0xa91   : > { %3775 = vmatpush3.bf16.msra.mxu0 %v4343_v31 }
 0xa92   : > { %3776 = vmatprep.subr.bf16.mxu0 %v4133_v24 }
 0xa95   : > { %3778 = vmatpush3.bf16.msra.mxu0 %v4349_v32 }
 0xa96   : > { %3779 = vmatprep.subr.bf16.mxu0 %v4133_v24 }
 0xa99   : > { %3781 = vmatpush3.bf16.msra.mxu0 %v4354_v33 }
 0xa9a   : > { %3782 = vmatprep.subr.bf16.mxu0 %v4133_v24 }
 0xa9d   : > { %3784 = vmatpush3.bf16.msra.mxu0 %v4360_v34 }
 0xa9e   : > { %3813 = vmatprep.subr.bf16.mxu0 %v4133_v24 }
 0xb53   : > { %v1106_v42 = vpop.f32.mrb[14].mxu0 }
 0xb54   : > { %v1107_v43 = vadd.f32 %v4183_v2, %v1106_v42  ;;  %v3175_v44 = vpop.f32.mrb[15].mxu0 }
 0xb56   : > { %4070 = vtanh.f32 %v1107_v43 }
 0xb60   : > { %v4071_v45 = vpop.eup %4070 }
 0xb61   : > { %v1111_v46 = vmul.f32 %v4071_v45, %v4365_v35 }
 0xb63   : > { %3209 = vmatmul.mubr.f32.vlgmr.msra.gmra.mrb[16].mxu0 %v1111_v46 }
 0xb64   : > { %3816 = vmatpush3.bf16.msk.msra.mxu0 %vm4292_vm5, %v4288_v22  ;;  %3257 = vmatprep.mubr.msk.f32.mxu0 %vm4131_vm1, %v4130_v21 }
 0xb65   : > { %3817 = vmatprep.subr.bf16.mxu0 %v4133_v24 }
 0xc36   : > { %v1178_v47 = vpop.f32.mrb[16].mxu0 }
 0xc37   : > { %v1182_v48 = vadd.f32 %v1178_v47, %v4460_v49  ;;  %v1331_v50 = vmul.f32 2.0, %v1178_v47  ;;  %v3210_v20 = vpop.f32.mrb[17].mxu0 }
 0xc39   : > { %v1183_v51 = vmax.f32 %v1182_v48, 0.0  ;;  %v1332_v52 = vadd.f32 %v1331_v50, %v1330_v40 }
 0xc3b   : > { %3216 = vmatmul.mubr.msk.f32.vlgmr.msra.gmra.mrb[12].mxu1 %vm140_vm6, %v1183_v51 }
 0xc3c   : > { %3791 = vmatpush3.bf16.msra.mxu1 %v4315_v27  ;;  %3250 = vmatprep.mubr.msk.f32.mxu1 %vm4131_vm1, %v4130_v21 }
 0xc3d   : > { %3792 = vmatprep.subr.bf16.mxu1 %v4133_v24 }
 0xc40   : > { %3794 = vmatpush3.bf16.msra.mxu1 %v4322_v28 }
 0xc41   : > { %3795 = vmatprep.subr.bf16.mxu1 %v4133_v24 }
 0xc44   : > { %3797 = vmatpush3.bf16.msra.mxu1 %v4330_v29 }
 0xc45   : > { %3798 = vmatprep.subr.bf16.mxu1 %v4133_v24 }
 0xc48   : > { %3800 = vmatpush3.bf16.msra.mxu1 %v4337_v30 }
 0xc49   : > { %3801 = vmatprep.subr.bf16.mxu1 %v4133_v24 }
 0xc4c   : > { %3803 = vmatpush3.bf16.msra.mxu1 %v4343_v31 }
 0xc4d   : > { %3804 = vmatprep.subr.bf16.mxu1 %v4133_v24 }
 0xc50   : > { %3806 = vmatpush3.bf16.msra.mxu1 %v4349_v32 }
 0xc51   : > { %3807 = vmatprep.subr.bf16.mxu1 %v4133_v24 }
 0xc54   : > { %3809 = vmatpush3.bf16.msra.mxu1 %v4354_v33 }
 0xc55   : > { %3810 = vmatprep.subr.bf16.mxu1 %v4133_v24 }
 0xc58   : > { %3812 = vmatpush3.bf16.msra.mxu1 %v4360_v34 }
 0xc59   : > { %3841 = vmatprep.subr.bf16.mxu1 %v4133_v24 }
 0xd0e   : > { %v1253_v53 = vpop.f32.mrb[12].mxu1 }
 0xd0f   : > { %v1254_v54 = vadd.f32 %v4183_v2, %v1253_v53  ;;  %v3217_v55 = vpop.f32.mrb[13].mxu1 }
 0xd11   : > { %4072 = vtanh.f32 %v1254_v54 }
 0xd1b   : > { %v4073_v56 = vpop.eup %4072 }
 0xd1c   : > { %v1258_v57 = vmul.f32 %v4073_v56, %v4365_v35 }
 0xd1e   : > { %3251 = vmatmul.mubr.f32.vlgmr.msra.gmra.mrb[14].mxu1 %v1258_v57 }
 0xd1f   : > { %3844 = vmatpush3.bf16.msk.msra.mxu1 %vm4292_vm5, %v4288_v22  ;;  %3299 = vmatprep.mubr.msk.f32.mxu1 %vm4131_vm1, %v4130_v21 }
 0xd20   : > { %3845 = vmatprep.subr.bf16.mxu1 %v4133_v24 }
 0xdf1   : > { %v1325_v58 = vpop.f32.mrb[14].mxu1 }
 0xdf2   : > { %v1333_v59 = vadd.f32 %v1332_v52, %v1325_v58  ;;  %v3252_v60 = vpop.f32.mrb[15].mxu1 }
 0xdf4   : > { %v1334_v61 = vmul.f32 0.16666667, %v1333_v59 }
 0xdf6   : > { %v4575_v62 = vadd.f32 %v1334_v61, %v4460_v49 }
 0xdf8   : > { %v1336_v63 = vmax.f32 %v4575_v62, 0.0 }
 0xdfa   : > { %3258 = vmatmul.mubr.msk.f32.vlgmr.msra.gmra.mrb[18].mxu0 %vm140_vm6, %v1336_v63 }
 0xdfb   : > { %3819 = vmatpush3.bf16.msra.mxu0 %v4315_v27  ;;  %3292 = vmatprep.mubr.msk.f32.mxu0 %vm4131_vm1, %v4130_v21 }
 0xdfc   : > { %3820 = vmatprep.subr.bf16.mxu0 %v4133_v24 }
 0xdff   : > { %3822 = vmatpush3.bf16.msra.mxu0 %v4322_v28 }
 0xe00   : > { %3823 = vmatprep.subr.bf16.mxu0 %v4133_v24 }
 0xe03   : > { %3825 = vmatpush3.bf16.msra.mxu0 %v4330_v29 }
 0xe04   : > { %3826 = vmatprep.subr.bf16.mxu0 %v4133_v24 }
 0xe07   : > { %3828 = vmatpush3.bf16.msra.mxu0 %v4337_v30 }
 0xe08   : > { %3829 = vmatprep.subr.bf16.mxu0 %v4133_v24 }
 0xe0b   : > { %3831 = vmatpush3.bf16.msra.mxu0 %v4343_v31 }
 0xe0c   : > { %3832 = vmatprep.subr.bf16.mxu0 %v4133_v24 }
 0xe0f   : > { %3834 = vmatpush3.bf16.msra.mxu0 %v4349_v32 }
 0xe10   : > { %3835 = vmatprep.subr.bf16.mxu0 %v4133_v24 }
 0xe13   : > { %3837 = vmatpush3.bf16.msra.mxu0 %v4354_v33 }
 0xe14   : > { %3838 = vmatprep.subr.bf16.mxu0 %v4133_v24 }
 0xe17   : > { %3840 = vmatpush3.bf16.msra.mxu0 %v4360_v34 }
 0xe18   : > { %3869 = vmatprep.subr.bf16.mxu0 %v4133_v24 }
 0xecd   : > { %v1406_v49 = vpop.f32.mrb[18].mxu0 }
 0xece   : > { %v1407_v25 = vadd.f32 %v4183_v2, %v1406_v49  ;;  %v3259_v26 = vpop.f32.mrb[19].mxu0 }
 0xed0   : > { %4074 = vtanh.f32 %v1407_v25 }
 0xeda   : > { %v4075_v36 = vpop.eup %4074 }
 0xedb   : > { %v1411_v37 = vmul.f32 %v4075_v36, %v4365_v35 }
 0xedd   : > { %3293 = vmatmul.mubr.f32.vlgmr.msra.gmra.mrb[20].mxu0 %v1411_v37 }
 0xede   : > { %3872 = vmatpush3.bf16.msk.msra.mxu0 %vm4292_vm5, %v4288_v22  ;;  %3341 = vmatprep.mubr.msk.f32.mxu0 %vm4131_vm1, %v4130_v21 }
 0xedf   : > { %3873 = vmatprep.subr.bf16.mxu0 %v4133_v24 }
 0xfb0   : > { %v1478_v38 = vpop.f32.mrb[20].mxu0 }
 0xfb1   : > { %v1482_v39 = vmul.f32 0.5, %v1478_v38  ;;  %v3294_v40 = vpop.f32.mrb[21].mxu0 }
 0xfb3   : > { %v1483_v41 = vadd.f32 %v1482_v39, %v4575_v62 }
 0xfb5   : > { %v1484_v42 = vmax.f32 %v1483_v41, 0.0 }
 0xfb7   : > { %3300 = vmatmul.mubr.msk.f32.vlgmr.msra.gmra.mrb[16].mxu1 %vm140_vm6, %v1484_v42 }
 0xfb8   : > { %3847 = vmatpush3.bf16.msra.mxu1 %v4315_v27  ;;  %3334 = vmatprep.mubr.msk.f32.mxu1 %vm4131_vm1, %v4130_v21 }
 0xfb9   : > { %3848 = vmatprep.subr.bf16.mxu1 %v4133_v24 }
 0xfbc   : > { %3850 = vmatpush3.bf16.msra.mxu1 %v4322_v28 }
 0xfbd   : > { %3851 = vmatprep.subr.bf16.mxu1 %v4133_v24 }
 0xfc0   : > { %3853 = vmatpush3.bf16.msra.mxu1 %v4330_v29 }
 0xfc1   : > { %3854 = vmatprep.subr.bf16.mxu1 %v4133_v24 }
 0xfc4   : > { %3856 = vmatpush3.bf16.msra.mxu1 %v4337_v30 }
 0xfc5   : > { %3857 = vmatprep.subr.bf16.mxu1 %v4133_v24 }
 0xfc8   : > { %3859 = vmatpush3.bf16.msra.mxu1 %v4343_v31 }
 0xfc9   : > { %3860 = vmatprep.subr.bf16.mxu1 %v4133_v24 }
 0xfcc   : > { %3862 = vmatpush3.bf16.msra.mxu1 %v4349_v32 }
 0xfcd   : > { %3863 = vmatprep.subr.bf16.mxu1 %v4133_v24 }
 0xfd0   : > { %3865 = vmatpush3.bf16.msra.mxu1 %v4354_v33 }
 0xfd1   : > { %3866 = vmatprep.subr.bf16.mxu1 %v4133_v24 }
 0xfd4   : > { %3868 = vmatpush3.bf16.msra.mxu1 %v4360_v34 }
 0xfd5   : > { %3897 = vmatprep.subr.bf16.mxu1 %v4133_v24 }
0x108a   : > { %v1554_v43 = vpop.f32.mrb[16].mxu1 }
0x108b   : > { %v1555_v44 = vadd.f32 %v4183_v2, %v1554_v43  ;;  %v3301_v45 = vpop.f32.mrb[17].mxu1 }
0x108d   : > { %4076 = vtanh.f32 %v1555_v44 }
0x1097   : > { %v4077_v46 = vpop.eup %4076 }
0x1098   : > { %v1559_v47 = vmul.f32 %v4077_v46, %v4365_v35 }
0x109a   : > { %3335 = vmatmul.mubr.f32.vlgmr.msra.gmra.mrb[18].mxu1 %v1559_v47 }
0x109b   : > { %3900 = vmatpush3.bf16.msk.msra.mxu1 %vm4292_vm5, %v4288_v22  ;;  %3383 = vmatprep.mubr.msk.f32.mxu1 %vm4131_vm1, %v4130_v21 }
0x109c   : > { %3901 = vmatprep.subr.bf16.mxu1 %v4133_v24 }
0x116d   : > { %v1626_v48 = vpop.f32.mrb[18].mxu1 }
0x116e   : > { %v1630_v50 = vmul.f32 0.5, %v1626_v48  ;;  %v1925_v20 = vmul.f32 2.0, %v1626_v48  ;;  %v3336_v51 = vpop.f32.mrb[19].mxu1 }
0x1170   : > { %v1631_v52 = vadd.f32 %v1630_v50, %v4575_v62  ;;  %v1926_v53 = vadd.f32 %v1925_v20, %v1478_v38 }
0x1172   : > { %v1632_v54 = vmax.f32 %v1631_v52, 0.0 }
0x1174   : > { %3342 = vmatmul.mubr.msk.f32.vlgmr.msra.gmra.mrb[22].mxu0 %vm140_vm6, %v1632_v54 }
0x1175   : > { %3875 = vmatpush3.bf16.msra.mxu0 %v4315_v27  ;;  %3376 = vmatprep.mubr.msk.f32.mxu0 %vm4131_vm1, %v4130_v21 }
0x1176   : > { %3876 = vmatprep.subr.bf16.mxu0 %v4133_v24 }
0x1179   : > { %3878 = vmatpush3.bf16.msra.mxu0 %v4322_v28 }
0x117a   : > { %3879 = vmatprep.subr.bf16.mxu0 %v4133_v24 }
0x117d   : > { %3881 = vmatpush3.bf16.msra.mxu0 %v4330_v29 }
0x117e   : > { %3882 = vmatprep.subr.bf16.mxu0 %v4133_v24 }
0x1181   : > { %3884 = vmatpush3.bf16.msra.mxu0 %v4337_v30 }
0x1182   : > { %3885 = vmatprep.subr.bf16.mxu0 %v4133_v24 }
0x1185   : > { %3887 = vmatpush3.bf16.msra.mxu0 %v4343_v31 }
0x1186   : > { %3888 = vmatprep.subr.bf16.mxu0 %v4133_v24 }
0x1189   : > { %3890 = vmatpush3.bf16.msra.mxu0 %v4349_v32 }
0x118a   : > { %3891 = vmatprep.subr.bf16.mxu0 %v4133_v24 }
0x118d   : > { %3893 = vmatpush3.bf16.msra.mxu0 %v4354_v33 }
0x118e   : > { %3894 = vmatprep.subr.bf16.mxu0 %v4133_v24 }
0x1191   : > { %3896 = vmatpush3.bf16.msra.mxu0 %v4360_v34 }
0x1192   : > { %3925 = vmatprep.subr.bf16.mxu0 %v4133_v24 }
0x1247   : > { %v1702_v55 = vpop.f32.mrb[22].mxu0 }
0x1248   : > { %v1703_v56 = vadd.f32 %v4183_v2, %v1702_v55  ;;  %v3343_v57 = vpop.f32.mrb[23].mxu0 }
0x124a   : > { %4078 = vtanh.f32 %v1703_v56 }
0x1254   : > { %v4079_v58 = vpop.eup %4078 }
0x1255   : > { %v1707_v59 = vmul.f32 %v4079_v58, %v4365_v35 }
0x1257   : > { %3377 = vmatmul.mubr.f32.vlgmr.msra.gmra.mrb[24].mxu0 %v1707_v59 }
0x1258   : > { %3928 = vmatpush3.bf16.msk.msra.mxu0 %vm4292_vm5, %v4288_v22  ;;  %3425 = vmatprep.mubr.msk.f32.mxu0 %vm4131_vm1, %v4130_v21 }
0x1259   : > { %3929 = vmatprep.subr.bf16.mxu0 %v4133_v24 }
0x132a   : > { %v1774_v60 = vpop.f32.mrb[24].mxu0 }
0x132b   : > { %v1778_v61 = vadd.f32 %v1774_v60, %v4575_v62  ;;  %v1927_v63 = vmul.f32 2.0, %v1774_v60  ;;  %v3378_v49 = vpop.f32.mrb[25].mxu0 }
0x132d   : > { %v1779_v25 = vmax.f32 %v1778_v61, 0.0  ;;  %v1928_v26 = vadd.f32 %v1927_v63, %v1926_v53 }
0x132f   : > { %3384 = vmatmul.mubr.msk.f32.vlgmr.msra.gmra.mrb[20].mxu1 %vm140_vm6, %v1779_v25 }
0x1330   : > { %3903 = vmatpush3.bf16.msra.mxu1 %v4315_v27  ;;  %3418 = vmatprep.mubr.msk.f32.mxu1 %vm4131_vm1, %v4130_v21 }
0x1331   : > { %3904 = vmatprep.subr.bf16.mxu1 %v4133_v24 }
0x1334   : > { %3906 = vmatpush3.bf16.msra.mxu1 %v4322_v28 }
0x1335   : > { %3907 = vmatprep.subr.bf16.mxu1 %v4133_v24 }
0x1338   : > { %3909 = vmatpush3.bf16.msra.mxu1 %v4330_v29 }
0x1339   : > { %3910 = vmatprep.subr.bf16.mxu1 %v4133_v24 }
0x133c   : > { %3912 = vmatpush3.bf16.msra.mxu1 %v4337_v30 }
0x133d   : > { %3913 = vmatprep.subr.bf16.mxu1 %v4133_v24 }
0x1340   : > { %3915 = vmatpush3.bf16.msra.mxu1 %v4343_v31 }
0x1341   : > { %3916 = vmatprep.subr.bf16.mxu1 %v4133_v24 }
0x1344   : > { %3918 = vmatpush3.bf16.msra.mxu1 %v4349_v32 }
0x1345   : > { %3919 = vmatprep.subr.bf16.mxu1 %v4133_v24 }
0x1348   : > { %3921 = vmatpush3.bf16.msra.mxu1 %v4354_v33 }
0x1349   : > { %3922 = vmatprep.subr.bf16.mxu1 %v4133_v24 }
0x134c   : > { %3924 = vmatpush3.bf16.msra.mxu1 %v4360_v34 }
0x134d   : > { %3953 = vmatprep.subr.bf16.mxu1 %v4133_v24 }
0x1402   : > { %v1849_v36 = vpop.f32.mrb[20].mxu1 }
0x1403   : > { %v1850_v37 = vadd.f32 %v4183_v2, %v1849_v36  ;;  %v3385_v38 = vpop.f32.mrb[21].mxu1 }
0x1405   : > { %4080 = vtanh.f32 %v1850_v37 }
0x140f   : > { %v4081_v39 = vpop.eup %4080 }
0x1410   : > { %v1854_v40 = vmul.f32 %v4081_v39, %v4365_v35 }
0x1412   : > { %3419 = vmatmul.mubr.f32.vlgmr.msra.gmra.mrb[22].mxu1 %v1854_v40 }
0x1413   : > { %3956 = vmatpush3.bf16.msk.msra.mxu1 %vm4292_vm5, %v4288_v22  ;;  %3467 = vmatprep.mubr.msk.f32.mxu1 %vm4131_vm1, %v4130_v21 }
0x1414   : > { %3957 = vmatprep.subr.bf16.mxu1 %v4133_v24 }
0x14e5   : > { %v1921_v41 = vpop.f32.mrb[22].mxu1 }
0x14e6   : > { %v1929_v42 = vadd.f32 %v1928_v26, %v1921_v41  ;;  %v3420_v43 = vpop.f32.mrb[23].mxu1 }
0x14e8   : > { %v1930_v44 = vmul.f32 0.16666667, %v1929_v42 }
0x14ea   : > { %v4690_v45 = vadd.f32 %v1930_v44, %v4575_v62 }
0x14ec   : > { %v1932_v46 = vmax.f32 %v4690_v45, 0.0 }
0x14ee   : > { %3426 = vmatmul.mubr.msk.f32.vlgmr.msra.gmra.mrb[26].mxu0 %vm140_vm6, %v1932_v46 }
0x14ef   : > { %3931 = vmatpush3.bf16.msra.mxu0 %v4315_v27  ;;  %3460 = vmatprep.mubr.msk.f32.mxu0 %vm4131_vm1, %v4130_v21 }
0x14f0   : > { %3932 = vmatprep.subr.bf16.mxu0 %v4133_v24 }
0x14f3   : > { %3934 = vmatpush3.bf16.msra.mxu0 %v4322_v28 }
0x14f4   : > { %3935 = vmatprep.subr.bf16.mxu0 %v4133_v24 }
0x14f7   : > { %3937 = vmatpush3.bf16.msra.mxu0 %v4330_v29 }
0x14f8   : > { %3938 = vmatprep.subr.bf16.mxu0 %v4133_v24 }
0x14fb   : > { %3940 = vmatpush3.bf16.msra.mxu0 %v4337_v30 }
0x14fc   : > { %3941 = vmatprep.subr.bf16.mxu0 %v4133_v24 }
0x14ff   : > { %3943 = vmatpush3.bf16.msra.mxu0 %v4343_v31 }
0x1500   : > { %3944 = vmatprep.subr.bf16.mxu0 %v4133_v24 }
0x1503   : > { %3946 = vmatpush3.bf16.msra.mxu0 %v4349_v32 }
0x1504   : > { %3947 = vmatprep.subr.bf16.mxu0 %v4133_v24 }
0x1507   : > { %3949 = vmatpush3.bf16.msra.mxu0 %v4354_v33 }
0x1508   : > { %3950 = vmatprep.subr.bf16.mxu0 %v4133_v24 }
0x150b   : > { %3952 = vmatpush3.bf16.msra.mxu0 %v4360_v34 }
0x150c   : > { %3981 = vmatprep.subr.bf16.mxu0 %v4133_v24 }
0x15c1   : > { %v2002_v62 = vpop.f32.mrb[26].mxu0 }
0x15c2   : > { %v2003_v47 = vadd.f32 %v4183_v2, %v2002_v62  ;;  %v3427_v48 = vpop.f32.mrb[27].mxu0 }
0x15c4   : > { %4082 = vtanh.f32 %v2003_v47 }
0x15ce   : > { %v4083_v50 = vpop.eup %4082 }
0x15cf   : > { %v2007_v20 = vmul.f32 %v4083_v50, %v4365_v35 }
0x15d1   : > { %3461 = vmatmul.mubr.f32.vlgmr.msra.gmra.mrb[28].mxu0 %v2007_v20 }
0x15d2   : > { %3984 = vmatpush3.bf16.msk.msra.mxu0 %vm4292_vm5, %v4288_v22  ;;  %3509 = vmatprep.mubr.msk.f32.mxu0 %vm4131_vm1, %v4130_v21 }
0x15d3   : > { %3985 = vmatprep.subr.bf16.mxu0 %v4133_v24 }
0x16a4   : > { %v2074_v51 = vpop.f32.mrb[28].mxu0 }
0x16a5   : > { %v2078_v52 = vmul.f32 0.5, %v2074_v51  ;;  %v3462_v53 = vpop.f32.mrb[29].mxu0 }
0x16a7   : > { %v2079_v54 = vadd.f32 %v2078_v52, %v4690_v45 }
0x16a9   : > { %v2080_v55 = vmax.f32 %v2079_v54, 0.0 }
0x16ab   : > { %3468 = vmatmul.mubr.msk.f32.vlgmr.msra.gmra.mrb[24].mxu1 %vm140_vm6, %v2080_v55 }
0x16ac   : > { %3959 = vmatpush3.bf16.msra.mxu1 %v4315_v27  ;;  %3502 = vmatprep.mubr.msk.f32.mxu1 %vm4131_vm1, %v4130_v21 }
0x16ad   : > { %3960 = vmatprep.subr.bf16.mxu1 %v4133_v24 }
0x16b0   : > { %3962 = vmatpush3.bf16.msra.mxu1 %v4322_v28 }
0x16b1   : > { %3963 = vmatprep.subr.bf16.mxu1 %v4133_v24 }
0x16b4   : > { %3965 = vmatpush3.bf16.msra.mxu1 %v4330_v29 }
0x16b5   : > { %3966 = vmatprep.subr.bf16.mxu1 %v4133_v24 }
0x16b8   : > { %3968 = vmatpush3.bf16.msra.mxu1 %v4337_v30 }
0x16b9   : > { %3969 = vmatprep.subr.bf16.mxu1 %v4133_v24 }
0x16bc   : > { %3971 = vmatpush3.bf16.msra.mxu1 %v4343_v31 }
0x16bd   : > { %3972 = vmatprep.subr.bf16.mxu1 %v4133_v24 }
0x16c0   : > { %3974 = vmatpush3.bf16.msra.mxu1 %v4349_v32 }
0x16c1   : > { %3975 = vmatprep.subr.bf16.mxu1 %v4133_v24 }
0x16c4   : > { %3977 = vmatpush3.bf16.msra.mxu1 %v4354_v33 }
0x16c5   : > { %3978 = vmatprep.subr.bf16.mxu1 %v4133_v24 }
0x16c8   : > { %3980 = vmatpush3.bf16.msra.mxu1 %v4360_v34 }
0x16c9   : > { %4009 = vmatprep.subr.bf16.mxu1 %v4133_v24 }
0x177e   : > { %v2150_v56 = vpop.f32.mrb[24].mxu1 }
0x177f   : > { %v2151_v57 = vadd.f32 %v4183_v2, %v2150_v56  ;;  %v3469_v58 = vpop.f32.mrb[25].mxu1 }
0x1781   : > { %4084 = vtanh.f32 %v2151_v57 }
0x178b   : > { %v4085_v59 = vpop.eup %4084 }
0x178c   : > { %v2155_v60 = vmul.f32 %v4085_v59, %v4365_v35 }
0x178e   : > { %3503 = vmatmul.mubr.f32.vlgmr.msra.gmra.mrb[26].mxu1 %v2155_v60 }
0x178f   : > { %4012 = vmatpush3.bf16.msk.msra.mxu1 %vm4292_vm5, %v4288_v22  ;;  %3551 = vmatprep.mubr.msk.f32.mxu1 %vm4131_vm1, %v4130_v21 }
0x1790   : > { %4013 = vmatprep.subr.bf16.mxu1 %v4133_v24 }
0x1861   : > { %v2222_v61 = vpop.f32.mrb[26].mxu1 }
0x1862   : > { %v2226_v63 = vmul.f32 0.5, %v2222_v61  ;;  %v2521_v49 = vmul.f32 2.0, %v2222_v61  ;;  %v3504_v25 = vpop.f32.mrb[27].mxu1 }
0x1864   : > { %v2227_v26 = vadd.f32 %v2226_v63, %v4690_v45  ;;  %v2522_v36 = vadd.f32 %v2521_v49, %v2074_v51 }
0x1866   : > { %v2228_v37 = vmax.f32 %v2227_v26, 0.0 }
0x1868   : > { %3510 = vmatmul.mubr.msk.f32.vlgmr.msra.gmra.mrb[30].mxu0 %vm140_vm6, %v2228_v37 }
0x1869   : > { %3987 = vmatpush3.bf16.msra.mxu0 %v4315_v27  ;;  %3544 = vmatprep.mubr.msk.f32.mxu0 %vm4131_vm1, %v4130_v21 }
0x186a   : > { %3988 = vmatprep.subr.bf16.mxu0 %v4133_v24 }
0x186d   : > { %3990 = vmatpush3.bf16.msra.mxu0 %v4322_v28 }
0x186e   : > { %3991 = vmatprep.subr.bf16.mxu0 %v4133_v24 }
0x1871   : > { %3993 = vmatpush3.bf16.msra.mxu0 %v4330_v29 }
0x1872   : > { %3994 = vmatprep.subr.bf16.mxu0 %v4133_v24 }
0x1875   : > { %3996 = vmatpush3.bf16.msra.mxu0 %v4337_v30 }
0x1876   : > { %3997 = vmatprep.subr.bf16.mxu0 %v4133_v24 }
0x1879   : > { %3999 = vmatpush3.bf16.msra.mxu0 %v4343_v31 }
0x187a   : > { %4000 = vmatprep.subr.bf16.mxu0 %v4133_v24 }
0x187d   : > { %4002 = vmatpush3.bf16.msra.mxu0 %v4349_v32 }
0x187e   : > { %4003 = vmatprep.subr.bf16.mxu0 %v4133_v24 }
0x1881   : > { %4005 = vmatpush3.bf16.msra.mxu0 %v4354_v33 }
0x1882   : > { %4006 = vmatprep.subr.bf16.mxu0 %v4133_v24 }
0x1885   : > { %4008 = vmatpush3.bf16.msra.mxu0 %v4360_v34 }
0x193b   : > { %v2298_v22 = vpop.f32.mrb[30].mxu0 }
0x193c   : > { %v2299_v23 = vadd.f32 %v4183_v2, %v2298_v22  ;;  %v3511_v38 = vpop.f32.mrb[31].mxu0 }
0x193e   : > { %4086 = vtanh.f32 %v2299_v23 }
0x1948   : > { %v4087_v39 = vpop.eup %4086 }
0x1949   : > { %v2303_v40 = vmul.f32 %v4087_v39, %v4365_v35 }
0x194b   : > { %3545 = vmatmul.mubr.f32.vlgmr.msra.gmra.mrb[32].mxu0 %v2303_v40 }
0x1a1e   : > { %v2370_v41 = vpop.f32.mrb[32].mxu0 }
0x1a1f   : > { %v2374_v42 = vadd.f32 %v2370_v41, %v4690_v45  ;;  %v2523_v43 = vmul.f32 2.0, %v2370_v41  ;;  %v3546_v44 = vpop.f32.mrb[33].mxu0 }
0x1a21   : > { %v2375_v46 = vmax.f32 %v2374_v42, 0.0  ;;  %v2524_v62 = vadd.f32 %v2523_v43, %v2522_v36 }
0x1a23   : > { %3552 = vmatmul.mubr.msk.f32.vlgmr.msra.gmra.mrb[28].mxu1 %vm140_vm6, %v2375_v46 }
0x1a24   : > { %4015 = vmatpush3.bf16.msra.mxu1 %v4315_v27  ;;  %3586 = vmatprep.mubr.msk.f32.mxu1 %vm4131_vm1, %v4130_v21 }
0x1a25   : > { %4016 = vmatprep.subr.bf16.mxu1 %v4133_v24 }
0x1a28   : > { %4018 = vmatpush3.bf16.msra.mxu1 %v4322_v28 }
0x1a29   : > { %4019 = vmatprep.subr.bf16.mxu1 %v4133_v24 }
0x1a2c   : > { %4021 = vmatpush3.bf16.msra.mxu1 %v4330_v29 }
0x1a2d   : > { %4022 = vmatprep.subr.bf16.mxu1 %v4133_v24 }
0x1a30   : > { %4024 = vmatpush3.bf16.msra.mxu1 %v4337_v30 }
0x1a31   : > { %4025 = vmatprep.subr.bf16.mxu1 %v4133_v24 }
0x1a34   : > { %4027 = vmatpush3.bf16.msra.mxu1 %v4343_v31 }
0x1a35   : > { %4028 = vmatprep.subr.bf16.mxu1 %v4133_v24 }
0x1a38   : > { %4030 = vmatpush3.bf16.msra.mxu1 %v4349_v32 }
0x1a39   : > { %4031 = vmatprep.subr.bf16.mxu1 %v4133_v24 }
0x1a3c   : > { %4033 = vmatpush3.bf16.msra.mxu1 %v4354_v33 }
0x1a3d   : > { %4034 = vmatprep.subr.bf16.mxu1 %v4133_v24 }
0x1a40   : > { %4036 = vmatpush3.bf16.msra.mxu1 %v4360_v34 }
0x1af6   : > { %v2445_v21 = vpop.f32.mrb[28].mxu1 }
0x1af7   : > { %v2446_v27 = vadd.f32 %v4183_v2, %v2445_v21  ;;  %v3553_v28 = vpop.f32.mrb[29].mxu1 }
0x1af9   : > { %4088 = vtanh.f32 %v2446_v27 }
0x1b03   : > { %v4089_v29 = vpop.eup %4088 }
0x1b04   : > { %v2450_v30 = vmul.f32 %v4089_v29, %v4365_v35 }
0x1b06   : > { %3587 = vmatmul.mubr.f32.vlgmr.msra.gmra.mrb[30].mxu1 %v2450_v30 }
0x1bd9   : > { %v2517_v31 = vpop.f32.mrb[30].mxu1 }
0x1bda   : > { %v2525_v47 = vadd.f32 %v2524_v62, %v2517_v31  ;;  %v3588_v32 = vpop.f32.mrb[31].mxu1  ;;  %49 = sbr.rel (!%p47_p0) target bundleno = 9 (0x9), region = 52 }
0x1bdc   : > { %v2526_v48 = vmul.f32 0.16666667, %v2525_v47 }
0x1bde   : > { %v2527_v50 = vadd.f32 %v2526_v48, %v4690_v45  }
0x1be0   : > { %v4818_v20 = vmov %v2527_v50  ;;  %2529 = vst.msk [vmem:[#allocation2] sm:$0xff] (%p47_p0), %vm140_vm6, %v2527_v50 }
0x1be1   :  { %4101 = shalt.err (!%p4098_p5)
}
0x1be2   :  { %s4102_s17 = scalar_lea.hbm %s4815_s6, 128 }
0x1be3   :  { %p4103_p6 = scmp.ne.s32.totalorder %s4815_s6, %s4102_s17  ;;  %p4106_p7 = scmp.lt.u32.totalorder %s4102_s17, %s4815_s6 }
0x1be5   :  { %p4108_p8 = pnand %p4106_p7, %p4103_p6 }
0x1be7   :  { %4111 = shalt.err (!%p4108_p8)
}
0x1be8   :  { %2539 = dma.vmem_to_hbm [thread:$0]  %s2537_s13, 128, %s4815_s6, [#allocation3]  }
0x1be9   :  { %4120 = dma.done.wait [#allocation3], 128  }
0x1bea   :  { %4121 = vsyncadd [#allocation3], 4294967168 }
0x1beb   :  { %2543 = vsyncpa [#allocation3], 1 }

</bundles_post_ra>
